<compile_context>
chip_gen: v5e
topology: v5e:2x2
jax: 0.10.0
libtpu: 0.0.40
codegen_flags: <defaults>
</compile_context>

<pallas_src>
import functools

import jax
import jax.numpy as jnp
import numpy as np
from jax.experimental import pallas as pl
from jax.experimental.pallas import tpu as pltpu


def _node_attention_kernel(enc_ref, x_ref, kemb_ref, bias_ref,
                           w_att_ref, b_att_ref, w1_ref, w2_ref, b_hid_ref,
                           out_ref, kscore_ref, *, d_model):
    enc = enc_ref[...]          # [bt, S, D]   f32
    xb = x_ref[...]             # [bt, N, 2D]  f32
    kemb = kemb_ref[...]        # [bt, K, D]   f32
    bias = bias_ref[...]        # [bt, S, 1]   f32 (-1e18 at masked rows, 0 else)

    bt, S, D = enc.shape
    N = xb.shape[1]
    hid = w1_ref.shape[1]
    scale = jnp.float32(d_model) ** jnp.float32(-0.5)

    # bf16 MXU operands, f32 accumulation; non-matmul math stays f32.
    enc_bf = enc.astype(jnp.bfloat16)

    # attention_layer: tanh(x @ W_att + b_att), batch folded into rows ->
    # a single tall [bt*N, 2D] x [2D, D] MXU pass.
    x_rows = xb.reshape(bt * N, 2 * D).astype(jnp.bfloat16)
    proj = jnp.tanh(
        jnp.dot(x_rows, w_att_ref[...].astype(jnp.bfloat16),
                preferred_element_type=jnp.float32)
        + b_att_ref[...]).reshape(bt, N, D)                       # [bt, N, D] f32
    proj_bf = proj.astype(jnp.bfloat16)

    # logits = enc @ proj^T ; k_logits = scale * (enc @ kemb^T).
    # Batched (proj/kemb are per-batch); contraction is along the shared D axis
    # so no XLU transposes.  Mask bias added in the f32 accumulator.
    logits = jnp.einsum("bsd,bnd->bsn", enc_bf, proj_bf,
                        preferred_element_type=jnp.float32) + bias
    k_logits = jnp.einsum("bsd,bkd->bsk", enc_bf, kemb.astype(jnp.bfloat16),
                          preferred_element_type=jnp.float32) * scale + bias

    # softmax over nodes; denominator reciprocal on the (otherwise free) EUP slot.
    m = jnp.max(logits, axis=-1, keepdims=True)
    e = jnp.exp(logits - m)
    scores = e * pl.reciprocal(jnp.sum(e, axis=-1, keepdims=True), approx=True)

    # k_scores = max(softmax(k_logits)) == 1 / sum(exp(k_logits - max)).
    # Exact reciprocal here (user-visible output).
    km = jnp.max(k_logits, axis=-1, keepdims=True)
    ksum = jnp.sum(jnp.exp(k_logits - km), axis=-1)               # [bt, S]
    kscore_ref[...] = pl.reciprocal(ksum)

    # dot_x = scores @ proj  -> [bt, S, D]  (batched: both operands per-batch)
    dot_x = jnp.einsum("bsn,bnd->bsd", scores.astype(jnp.bfloat16), proj_bf,
                       preferred_element_type=jnp.float32)

    # hidden_layer(cat(enc, dot_x)) == enc @ W1 + dot_x @ W2 + b, with the batch
    # folded into rows: two tall [bt*S, D] x [D, hid] MXU passes.
    enc_rows = enc_bf.reshape(bt * S, D)
    dot_rows = dot_x.reshape(bt * S, D).astype(jnp.bfloat16)
    h = (jnp.dot(enc_rows, w1_ref[...].astype(jnp.bfloat16),
                 preferred_element_type=jnp.float32)
         + jnp.dot(dot_rows, w2_ref[...].astype(jnp.bfloat16),
                   preferred_element_type=jnp.float32)
         + b_hid_ref[...])
    # f32 tanh (safe on v5e; switch to bf16 tanh on v6e/v7x only if EUP binds).
    out_ref[...] = jnp.tanh(h).reshape(bt, S, hid)


_ACT_VMEM_BUDGET = 24 << 20   # target for double-buffered activation blocks


def _pick_batch_tile(B, S, D, N, K, hid):
    """Largest batch tile that (a) fits the activation VMEM budget when
    double-buffered, (b) leaves >= 2 grid steps so v7x's second TensorCore gets
    work, and (c) keeps the (bt, S) k_score block sublane-aligned
    (bt % 8 == 0 or bt == B)."""
    per_b = 4 * (S * D + N * 2 * D + K * D + S + S * hid + S)   # f32 bytes / batch
    bt_vmem = max(1, _ACT_VMEM_BUDGET // (2 * per_b))           # 2x: double-buffered
    bt_mc = max(1, B // 2)                                      # >= 2 parallel steps
    bt = min(B, bt_vmem, bt_mc)
    if bt >= B:
        return B
    if bt < 8:
        # Too small to split on 8-row boundaries: tiny batches stay in one
        # (overhead-bound) step; larger ones clamp up to 8 (soft budget — the
        # vmem limit below is derived from the bt actually chosen).
        return B if B <= 8 else 8
    return (bt // 8) * 8


def node_attention_layer(enc_outputs, x, k_emb, mask, w_att, b_att, w_hid, b_hid):
    B, S, D = enc_outputs.shape
    N = x.shape[1]
    K = k_emb.shape[1]
    hid = w_hid.shape[1]

    # Cheap plain-JAX glue outside the hot path.
    add_bias = mask.astype(jnp.float32) * jnp.float32(-1e18)     # [B, S, 1]
    w1 = w_hid[:D, :]                                            # [D, hid]
    w2 = w_hid[D:, :]                                            # [D, hid]

    bt = _pick_batch_tile(B, S, D, N, K, hid)
    grid_b = pl.cdiv(B, bt)
    B_pad = grid_b * bt
    if B_pad != B:
        pad = ((0, B_pad - B), (0, 0), (0, 0))
        enc_outputs = jnp.pad(enc_outputs, pad)
        x = jnp.pad(x, pad)
        k_emb = jnp.pad(k_emb, pad)
        add_bias = jnp.pad(add_bias, pad)

    # VMEM limit derived from the actual working set: double-buffered activation
    # blocks + weights + in-kernel temporaries, with headroom; capped at 48 MiB
    # (safe on v7x's 64 MiB per-TC VMEM), floored at 32 MiB.
    act_bytes = 2 * bt * 4 * (S * D + N * 2 * D + K * D + S + S * hid + S)
    w_bytes = 4 * (2 * D * D + D + 2 * D * hid + hid)
    tmp_bytes = 4 * bt * (S * N + S * K + N * D + 2 * S * D + S * hid)
    vmem_limit = int(min(48 << 20,
                         max(32 << 20, 1.5 * (act_bytes + 2 * w_bytes + tmp_bytes))))

    kernel = functools.partial(_node_attention_kernel, d_model=D)

    def build(single_buffer_weights):
        # Constant-index weights never re-fetch; Buffered(1) frees the second
        # VMEM copy the default double-buffering would otherwise hold.
        wkw = ({"pipeline_mode": pl.Buffered(1)} if single_buffer_weights else {})
        return pl.pallas_call(
            kernel,
            out_shape=(jax.ShapeDtypeStruct((B_pad, S, hid), jnp.float32),
                       jax.ShapeDtypeStruct((B_pad, S), jnp.float32)),
            grid=(grid_b,),
            in_specs=[
                pl.BlockSpec((bt, S, D), lambda b: (b, 0, 0)),        # enc_outputs
                pl.BlockSpec((bt, N, 2 * D), lambda b: (b, 0, 0)),    # x (node feats)
                pl.BlockSpec((bt, K, D), lambda b: (b, 0, 0)),        # emb(key_concepts)
                pl.BlockSpec((bt, S, 1), lambda b: (b, 0, 0)),        # additive mask bias
                pl.BlockSpec((2 * D, D), lambda b: (0, 0), **wkw),    # attention_layer W
                pl.BlockSpec((1, D), lambda b: (0, 0), **wkw),        # attention_layer b
                pl.BlockSpec((D, hid), lambda b: (0, 0), **wkw),      # hidden W (enc half)
                pl.BlockSpec((D, hid), lambda b: (0, 0), **wkw),      # hidden W (dot_x half)
                pl.BlockSpec((1, hid), lambda b: (0, 0), **wkw),      # hidden b
            ],
            out_specs=(pl.BlockSpec((bt, S, hid), lambda b: (b, 0, 0)),
                       pl.BlockSpec((bt, S), lambda b: (b, 0))),
            compiler_params=pltpu.CompilerParams(
                dimension_semantics=("parallel",),
                vmem_limit_bytes=vmem_limit),
        )

    args = (enc_outputs, x, k_emb, add_bias, w_att, b_att, w1, w2, b_hid)
    try:
        out, kscore = build(True)(*args)
    except Exception:
        # Fallback for Mosaic builds that reject pipeline_mode on BlockSpec:
        # identical kernel, default (double-buffered) weight blocks.
        out, kscore = build(False)(*args)

    if B_pad != B:
        out = out[:B]
        kscore = kscore[:B]
    return out, kscore


if __name__ == "__main__":
    B, S, D, hid = 2, 16, 32, 32      # hid == d_model (module writes hid-out into d_model buffer)
    N, K, vocab = 8, 4, 50

    key = jax.random.PRNGKey(0)
    keys = jax.random.split(key, 8)

    enc = jax.random.normal(keys[0], (B, S, D), jnp.float32)
    x = jax.random.normal(keys[1], (B, N, 2 * D), jnp.float32)
    key_concepts = jax.random.randint(keys[2], (B, K), 0, vocab)
    emb_table = jax.random.normal(keys[3], (vocab, D), jnp.float32)   # self.emb weights
    mask_bool = jax.random.bernoulli(keys[4], 0.2, (B, S))            # True => masked
    mask = mask_bool.astype(jnp.float32)[..., None]                   # [B, S, 1]

    def linear_init(k, fan_in, fan_out):
        kw, kb = jax.random.split(k)
        bound = 1.0 / np.sqrt(fan_in)
        w = jax.random.uniform(kw, (fan_in, fan_out), jnp.float32, -bound, bound)
        b = jax.random.uniform(kb, (1, fan_out), jnp.float32, -bound, bound)
        return w, b

    w_att, b_att = linear_init(keys[5], 2 * D, D)      # nn.Linear(2*d_model, d_model)
    w_hid, b_hid = linear_init(keys[6], 2 * D, hid)    # nn.Linear(2*d_model, hid)
    # note: self.attention_v is defined in __init__ but never used in forward.

    k_emb = emb_table[key_concepts]                    # glue: embedding gather -> [B, K, D]

    out, kscores = node_attention_layer(enc, x, k_emb, mask,
                                        w_att, b_att, w_hid, b_hid)
    jax.block_until_ready((out, kscores))

    # pure-JAX reference for validation
    def ref(enc, x, k_emb, mask_b, w_att, b_att, w_hid, b_hid):
        scale = D ** (-0.5)
        proj = jnp.tanh(x @ w_att + b_att)                          # [B, N, D]
        logits = jnp.einsum("bsd,bnd->bsn", enc, proj)
        k_logits = jnp.einsum("bsd,bkd->bsk", enc * scale, k_emb)
        logits = jnp.where(mask_b, -1e18, logits)
        k_logits = jnp.where(mask_b, -1e18, k_logits)
        scores = jax.nn.softmax(logits, axis=-1)
        k_sc = jnp.max(jax.nn.softmax(k_logits, axis=-1), axis=-1)
        dot_x = jnp.einsum("bsn,bnd->bsd", scores, proj)
        temp = jnp.concatenate([enc, dot_x], axis=-1)
        return jnp.tanh(temp @ w_hid + b_hid), k_sc

    ref_out, ref_k = ref(enc, x, k_emb, mask_bool[..., None],
                         w_att, b_att, w_hid, b_hid)
    np.testing.assert_allclose(np.asarray(out), np.asarray(ref_out), atol=2e-2, rtol=2e-2)
    np.testing.assert_allclose(np.asarray(kscores), np.asarray(ref_k), atol=2e-2, rtol=2e-2)

    print("KERNEL_OK")
</pallas_src>

<mosaic_0001>
module attributes {stable_mosaic.version = 11 : i64} {
  func.func @_node_attention_kernel(%arg0: i32, %arg1: memref<2x16x32xf32, #tpu.memory_space<vmem>>, %arg2: memref<2x8x64xf32, #tpu.memory_space<vmem>>, %arg3: memref<2x4x32xf32, #tpu.memory_space<vmem>>, %arg4: memref<2x16x1xf32, #tpu.memory_space<vmem>>, %arg5: memref<64x32xf32, #tpu.memory_space<vmem>>, %arg6: memref<1x32xf32, #tpu.memory_space<vmem>>, %arg7: memref<32x32xf32, #tpu.memory_space<vmem>>, %arg8: memref<32x32xf32, #tpu.memory_space<vmem>>, %arg9: memref<1x32xf32, #tpu.memory_space<vmem>>, %arg10: memref<2x16x32xf32, #tpu.memory_space<vmem>>, %arg11: memref<2x16xf32, #tpu.memory_space<vmem>>) attributes {dimension_semantics = [#tpu.dimension_semantics<parallel>], iteration_bounds = array<i64: 1>, scalar_prefetch = 0 : i64, scratch_operands = 0 : i64, tpu.core_type = #tpu.core_type<tc>, window_params = [{transform_indices = @transform_0, window_bounds = array<i64: 2, 16, 32>}, {transform_indices = @transform_1, window_bounds = array<i64: 2, 8, 64>}, {transform_indices = @transform_2, window_bounds = array<i64: 2, 4, 32>}, {transform_indices = @transform_3, window_bounds = array<i64: 2, 16, 1>}, {pipeline_mode = #tpu.pipeline_mode<synchronous>, transform_indices = @transform_4, window_bounds = array<i64: 64, 32>}, {pipeline_mode = #tpu.pipeline_mode<synchronous>, transform_indices = @transform_5, window_bounds = array<i64: 1, 32>}, {pipeline_mode = #tpu.pipeline_mode<synchronous>, transform_indices = @transform_6, window_bounds = array<i64: 32, 32>}, {pipeline_mode = #tpu.pipeline_mode<synchronous>, transform_indices = @transform_7, window_bounds = array<i64: 32, 32>}, {pipeline_mode = #tpu.pipeline_mode<synchronous>, transform_indices = @transform_8, window_bounds = array<i64: 1, 32>}, {transform_indices = @transform_9, window_bounds = array<i64: 2, 16, 32>}, {transform_indices = @transform_10, window_bounds = array<i64: 2, 16>}]} {
    %c0 = arith.constant 0 : index
    %c0_0 = arith.constant 0 : index
    %c0_1 = arith.constant 0 : index
    %0 = vector.load %arg1[%c0, %c0_0, %c0_1] : memref<2x16x32xf32, #tpu.memory_space<vmem>>, vector<2x16x32xf32>
    %c0_2 = arith.constant 0 : index
    %c0_3 = arith.constant 0 : index
    %c0_4 = arith.constant 0 : index
    %1 = vector.load %arg2[%c0_2, %c0_3, %c0_4] : memref<2x8x64xf32, #tpu.memory_space<vmem>>, vector<2x8x64xf32>
    %c0_5 = arith.constant 0 : index
    %c0_6 = arith.constant 0 : index
    %c0_7 = arith.constant 0 : index
    %2 = vector.load %arg3[%c0_5, %c0_6, %c0_7] : memref<2x4x32xf32, #tpu.memory_space<vmem>>, vector<2x4x32xf32>
    %c0_8 = arith.constant 0 : index
    %c0_9 = arith.constant 0 : index
    %c0_10 = arith.constant 0 : index
    %3 = vector.load %arg4[%c0_8, %c0_9, %c0_10] : memref<2x16x1xf32, #tpu.memory_space<vmem>>, vector<2x16x1xf32>
    %cst = arith.constant 3.200000e+01 : f32
    %cst_11 = arith.constant -5.000000e-01 : f32
    %4 = math.powf %cst, %cst_11 : f32
    %5 = arith.truncf %0 : vector<2x16x32xf32> to vector<2x16x32xbf16>
    %6 = vector.shape_cast %1 : vector<2x8x64xf32> to vector<16x64xf32>
    %7 = arith.truncf %6 : vector<16x64xf32> to vector<16x64xbf16>
    %c0_12 = arith.constant 0 : index
    %c0_13 = arith.constant 0 : index
    %8 = vector.load %arg5[%c0_12, %c0_13] : memref<64x32xf32, #tpu.memory_space<vmem>>, vector<64x32xf32>
    %9 = arith.truncf %8 : vector<64x32xf32> to vector<64x32xbf16>
    %cst_14 = arith.constant dense<0.000000e+00> : vector<16x32xf32>
    %10 = tpu.matmul %7, %9, %cst_14 {dimension_numbers = #tpu.dot_dimension_numbers<[1], [0], [0], [1], [0, 0, 1, 1], [], []>} : vector<16x64xbf16>, vector<64x32xbf16>, vector<16x32xf32> -> vector<16x32xf32>
    %c0_15 = arith.constant 0 : index
    %c0_16 = arith.constant 0 : index
    %11 = vector.load %arg6[%c0_15, %c0_16] : memref<1x32xf32, #tpu.memory_space<vmem>>, vector<1x32xf32>
    %12 = vector.broadcast %11 : vector<1x32xf32> to vector<16x32xf32>
    %13 = arith.addf %10, %12 : vector<16x32xf32>
    %14 = math.tanh %13 : vector<16x32xf32>
    %15 = vector.shape_cast %14 : vector<16x32xf32> to vector<2x8x32xf32>
    %16 = arith.truncf %15 : vector<2x8x32xf32> to vector<2x8x32xbf16>
    "tpu.trace_start"() <{level = 10 : i32, message = "bsd,bnd->bsn"}> : () -> ()
    %cst_17 = arith.constant dense<0.000000e+00> : vector<2x16x8xf32>
    %17 = tpu.matmul %5, %16, %cst_17 {dimension_numbers = #tpu.dot_dimension_numbers<[2], [2], [1], [1], [0, 0, 0, 1, 1, 1], [0], [0]>} : vector<2x16x32xbf16>, vector<2x8x32xbf16>, vector<2x16x8xf32> -> vector<2x16x8xf32>
    "tpu.trace_stop"() : () -> ()
    %18 = vector.broadcast %3 : vector<2x16x1xf32> to vector<2x16x8xf32>
    %19 = arith.addf %17, %18 : vector<2x16x8xf32>
    %20 = arith.truncf %2 : vector<2x4x32xf32> to vector<2x4x32xbf16>
    "tpu.trace_start"() <{level = 10 : i32, message = "bsd,bkd->bsk"}> : () -> ()
    %cst_18 = arith.constant dense<0.000000e+00> : vector<2x16x4xf32>
    %21 = tpu.matmul %5, %20, %cst_18 {dimension_numbers = #tpu.dot_dimension_numbers<[2], [2], [1], [1], [0, 0, 0, 1, 1, 1], [0], [0]>} : vector<2x16x32xbf16>, vector<2x4x32xbf16>, vector<2x16x4xf32> -> vector<2x16x4xf32>
    "tpu.trace_stop"() : () -> ()
    %22 = vector.broadcast %4 : f32 to vector<2x16x4xf32>
    %23 = arith.mulf %21, %22 : vector<2x16x4xf32>
    %24 = vector.broadcast %3 : vector<2x16x1xf32> to vector<2x16x4xf32>
    %25 = arith.addf %23, %24 : vector<2x16x4xf32>
    %cst_19 = arith.constant dense<0xFF800000> : vector<2x16xf32>
    %26 = vector.multi_reduction <maximumf>, %19, %cst_19 [2] : vector<2x16x8xf32> to vector<2x16xf32>
    %27 = vector.shape_cast %26 : vector<2x16xf32> to vector<2x16x1xf32>
    %28 = vector.broadcast %27 : vector<2x16x1xf32> to vector<2x16x8xf32>
    %29 = arith.subf %19, %28 : vector<2x16x8xf32>
    %30 = math.exp %29 : vector<2x16x8xf32>
    %cst_20 = arith.constant dense<0.000000e+00> : vector<2x16xf32>
    %31 = vector.multi_reduction <add>, %30, %cst_20 [2] : vector<2x16x8xf32> to vector<2x16xf32>
    %32 = vector.shape_cast %31 : vector<2x16xf32> to vector<2x16x1xf32>
    %33 = tpu.reciprocal %32 {approx = true} : vector<2x16x1xf32> -> vector<2x16x1xf32>
    %34 = vector.broadcast %33 : vector<2x16x1xf32> to vector<2x16x8xf32>
    %35 = arith.mulf %30, %34 : vector<2x16x8xf32>
    %cst_21 = arith.constant dense<0xFF800000> : vector<2x16xf32>
    %36 = vector.multi_reduction <maximumf>, %25, %cst_21 [2] : vector<2x16x4xf32> to vector<2x16xf32>
    %37 = vector.shape_cast %36 : vector<2x16xf32> to vector<2x16x1xf32>
    %38 = vector.broadcast %37 : vector<2x16x1xf32> to vector<2x16x4xf32>
    %39 = arith.subf %25, %38 : vector<2x16x4xf32>
    %40 = math.exp %39 : vector<2x16x4xf32>
    %cst_22 = arith.constant dense<0.000000e+00> : vector<2x16xf32>
    %41 = vector.multi_reduction <add>, %40, %cst_22 [2] : vector<2x16x4xf32> to vector<2x16xf32>
    %42 = tpu.reciprocal %41 : vector<2x16xf32> -> vector<2x16xf32>
    %c0_23 = arith.constant 0 : index
    %c0_24 = arith.constant 0 : index
    %43 = vector.load %arg11[%c0_23, %c0_24] : memref<2x16xf32, #tpu.memory_space<vmem>>, vector<2x16xf32>
    tpu.vector_store %arg11[%c0_23, %c0_24], %42 {strides = array<i32>} : memref<2x16xf32, #tpu.memory_space<vmem>>, vector<2x16xf32>,
    %44 = arith.truncf %35 : vector<2x16x8xf32> to vector<2x16x8xbf16>
    "tpu.trace_start"() <{level = 10 : i32, message = "bsn,bnd->bsd"}> : () -> ()
    %cst_25 = arith.constant dense<0.000000e+00> : vector<2x16x32xf32>
    %45 = tpu.matmul %44, %16, %cst_25 {dimension_numbers = #tpu.dot_dimension_numbers<[2], [1], [1], [2], [0, 0, 0, 1, 1, 2], [0], [0]>} : vector<2x16x8xbf16>, vector<2x8x32xbf16>, vector<2x16x32xf32> -> vector<2x16x32xf32>
    "tpu.trace_stop"() : () -> ()
    %46 = vector.shape_cast %5 : vector<2x16x32xbf16> to vector<32x32xbf16>
    %47 = vector.shape_cast %45 : vector<2x16x32xf32> to vector<32x32xf32>
    %48 = arith.truncf %47 : vector<32x32xf32> to vector<32x32xbf16>
    %c0_26 = arith.constant 0 : index
    %c0_27 = arith.constant 0 : index
    %49 = vector.load %arg7[%c0_26, %c0_27] : memref<32x32xf32, #tpu.memory_space<vmem>>, vector<32x32xf32>
    %50 = arith.truncf %49 : vector<32x32xf32> to vector<32x32xbf16>
    %cst_28 = arith.constant dense<0.000000e+00> : vector<32x32xf32>
    %51 = tpu.matmul %46, %50, %cst_28 {dimension_numbers = #tpu.dot_dimension_numbers<[1], [0], [0], [1], [0, 0, 1, 1], [], []>} : vector<32x32xbf16>, vector<32x32xbf16>, vector<32x32xf32> -> vector<32x32xf32>
    %c0_29 = arith.constant 0 : index
    %c0_30 = arith.constant 0 : index
    %52 = vector.load %arg8[%c0_29, %c0_30] : memref<32x32xf32, #tpu.memory_space<vmem>>, vector<32x32xf32>
    %53 = arith.truncf %52 : vector<32x32xf32> to vector<32x32xbf16>
    %cst_31 = arith.constant dense<0.000000e+00> : vector<32x32xf32>
    %54 = tpu.matmul %48, %53, %cst_31 {dimension_numbers = #tpu.dot_dimension_numbers<[1], [0], [0], [1], [0, 0, 1, 1], [], []>} : vector<32x32xbf16>, vector<32x32xbf16>, vector<32x32xf32> -> vector<32x32xf32>
    %55 = arith.addf %51, %54 : vector<32x32xf32>
    %c0_32 = arith.constant 0 : index
    %c0_33 = arith.constant 0 : index
    %56 = vector.load %arg9[%c0_32, %c0_33] : memref<1x32xf32, #tpu.memory_space<vmem>>, vector<1x32xf32>
    %57 = vector.broadcast %56 : vector<1x32xf32> to vector<32x32xf32>
    %58 = arith.addf %55, %57 : vector<32x32xf32>
    %59 = math.tanh %58 : vector<32x32xf32>
    %60 = vector.shape_cast %59 : vector<32x32xf32> to vector<2x16x32xf32>
    %c0_34 = arith.constant 0 : index
    %c0_35 = arith.constant 0 : index
    %c0_36 = arith.constant 0 : index
    %61 = vector.load %arg10[%c0_34, %c0_35, %c0_36] : memref<2x16x32xf32, #tpu.memory_space<vmem>>, vector<2x16x32xf32>
    tpu.vector_store %arg10[%c0_34, %c0_35, %c0_36], %60 {strides = array<i32>} : memref<2x16x32xf32, #tpu.memory_space<vmem>>, vector<2x16x32xf32>,
    return
  }
  func.func @transform_0(%arg0: i32) -> (i32, i32, i32) {
    %c0_i32 = arith.constant 0 : i32
    %c0_i32_0 = arith.constant 0 : i32
    %c0_i32_1 = arith.constant 0 : i32
    return %arg0, %c0_i32, %c0_i32_0 : i32, i32, i32
  }
  func.func @transform_1(%arg0: i32) -> (i32, i32, i32) {
    %c0_i32 = arith.constant 0 : i32
    %c0_i32_0 = arith.constant 0 : i32
    %c0_i32_1 = arith.constant 0 : i32
    return %arg0, %c0_i32, %c0_i32_0 : i32, i32, i32
  }
  func.func @transform_2(%arg0: i32) -> (i32, i32, i32) {
    %c0_i32 = arith.constant 0 : i32
    %c0_i32_0 = arith.constant 0 : i32
    %c0_i32_1 = arith.constant 0 : i32
    return %arg0, %c0_i32, %c0_i32_0 : i32, i32, i32
  }
  func.func @transform_3(%arg0: i32) -> (i32, i32, i32) {
    %c0_i32 = arith.constant 0 : i32
    %c0_i32_0 = arith.constant 0 : i32
    %c0_i32_1 = arith.constant 0 : i32
    return %arg0, %c0_i32, %c0_i32_0 : i32, i32, i32
  }
  func.func @transform_4(%arg0: i32) -> (i32, i32) {
    %c0_i32 = arith.constant 0 : i32
    %c0_i32_0 = arith.constant 0 : i32
    %c0_i32_1 = arith.constant 0 : i32
    return %c0_i32, %c0_i32_0 : i32, i32
  }
  func.func @transform_5(%arg0: i32) -> (i32, i32) {
    %c0_i32 = arith.constant 0 : i32
    %c0_i32_0 = arith.constant 0 : i32
    %c0_i32_1 = arith.constant 0 : i32
    return %c0_i32, %c0_i32_0 : i32, i32
  }
  func.func @transform_6(%arg0: i32) -> (i32, i32) {
    %c0_i32 = arith.constant 0 : i32
    %c0_i32_0 = arith.constant 0 : i32
    %c0_i32_1 = arith.constant 0 : i32
    return %c0_i32, %c0_i32_0 : i32, i32
  }
  func.func @transform_7(%arg0: i32) -> (i32, i32) {
    %c0_i32 = arith.constant 0 : i32
    %c0_i32_0 = arith.constant 0 : i32
    %c0_i32_1 = arith.constant 0 : i32
    return %c0_i32, %c0_i32_0 : i32, i32
  }
  func.func @transform_8(%arg0: i32) -> (i32, i32) {
    %c0_i32 = arith.constant 0 : i32
    %c0_i32_0 = arith.constant 0 : i32
    %c0_i32_1 = arith.constant 0 : i32
    return %c0_i32, %c0_i32_0 : i32, i32
  }
  func.func @transform_9(%arg0: i32) -> (i32, i32, i32) {
    %c0_i32 = arith.constant 0 : i32
    %c0_i32_0 = arith.constant 0 : i32
    %c0_i32_1 = arith.constant 0 : i32
    return %arg0, %c0_i32, %c0_i32_0 : i32, i32, i32
  }
  func.func @transform_10(%arg0: i32) -> (i32, i32) {
    %c0_i32 = arith.constant 0 : i32
    %c0_i32_0 = arith.constant 0 : i32
    return %arg0, %c0_i32 : i32, i32
  }
}

module attributes {stable_mosaic.version = 11 : i64} {
  func.func @_node_attention_kernel(%arg0: i32, %arg1: memref<2x16x32xf32, #tpu.memory_space<vmem>>, %arg2: memref<2x8x64xf32, #tpu.memory_space<vmem>>, %arg3: memref<2x4x32xf32, #tpu.memory_space<vmem>>, %arg4: memref<2x16x1xf32, #tpu.memory_space<vmem>>, %arg5: memref<64x32xf32, #tpu.memory_space<vmem>>, %arg6: memref<1x32xf32, #tpu.memory_space<vmem>>, %arg7: memref<32x32xf32, #tpu.memory_space<vmem>>, %arg8: memref<32x32xf32, #tpu.memory_space<vmem>>, %arg9: memref<1x32xf32, #tpu.memory_space<vmem>>, %arg10: memref<2x16x32xf32, #tpu.memory_space<vmem>>, %arg11: memref<2x16xf32, #tpu.memory_space<vmem>>) attributes {dimension_semantics = [#tpu.dimension_semantics<parallel>], iteration_bounds = array<i64: 1>, scalar_prefetch = 0 : i64, scratch_operands = 0 : i64, tpu.core_type = #tpu.core_type<tc>, window_params = [{transform_indices = @transform_0, window_bounds = array<i64: 2, 16, 32>}, {transform_indices = @transform_1, window_bounds = array<i64: 2, 8, 64>}, {transform_indices = @transform_2, window_bounds = array<i64: 2, 4, 32>}, {transform_indices = @transform_3, window_bounds = array<i64: 2, 16, 1>}, {pipeline_mode = #tpu.pipeline_mode<synchronous>, transform_indices = @transform_4, window_bounds = array<i64: 64, 32>}, {pipeline_mode = #tpu.pipeline_mode<synchronous>, transform_indices = @transform_5, window_bounds = array<i64: 1, 32>}, {pipeline_mode = #tpu.pipeline_mode<synchronous>, transform_indices = @transform_6, window_bounds = array<i64: 32, 32>}, {pipeline_mode = #tpu.pipeline_mode<synchronous>, transform_indices = @transform_7, window_bounds = array<i64: 32, 32>}, {pipeline_mode = #tpu.pipeline_mode<synchronous>, transform_indices = @transform_8, window_bounds = array<i64: 1, 32>}, {transform_indices = @transform_9, window_bounds = array<i64: 2, 16, 32>}, {transform_indices = @transform_10, window_bounds = array<i64: 2, 16>}]} {
    %c0 = arith.constant 0 : index
    %c0_0 = arith.constant 0 : index
    %c0_1 = arith.constant 0 : index
    %0 = vector.load %arg1[%c0, %c0_0, %c0_1] : memref<2x16x32xf32, #tpu.memory_space<vmem>>, vector<2x16x32xf32>
    %c0_2 = arith.constant 0 : index
    %c0_3 = arith.constant 0 : index
    %c0_4 = arith.constant 0 : index
    %1 = vector.load %arg2[%c0_2, %c0_3, %c0_4] : memref<2x8x64xf32, #tpu.memory_space<vmem>>, vector<2x8x64xf32>
    %c0_5 = arith.constant 0 : index
    %c0_6 = arith.constant 0 : index
    %c0_7 = arith.constant 0 : index
    %2 = vector.load %arg3[%c0_5, %c0_6, %c0_7] : memref<2x4x32xf32, #tpu.memory_space<vmem>>, vector<2x4x32xf32>
    %c0_8 = arith.constant 0 : index
    %c0_9 = arith.constant 0 : index
    %c0_10 = arith.constant 0 : index
    %3 = vector.load %arg4[%c0_8, %c0_9, %c0_10] : memref<2x16x1xf32, #tpu.memory_space<vmem>>, vector<2x16x1xf32>
    %cst = arith.constant 3.200000e+01 : f32
    %cst_11 = arith.constant -5.000000e-01 : f32
    %4 = math.powf %cst, %cst_11 : f32
    %5 = arith.truncf %0 : vector<2x16x32xf32> to vector<2x16x32xbf16>
    %6 = vector.shape_cast %1 : vector<2x8x64xf32> to vector<16x64xf32>
    %7 = arith.truncf %6 : vector<16x64xf32> to vector<16x64xbf16>
    %c0_12 = arith.constant 0 : index
    %c0_13 = arith.constant 0 : index
    %8 = vector.load %arg5[%c0_12, %c0_13] : memref<64x32xf32, #tpu.memory_space<vmem>>, vector<64x32xf32>
    %9 = arith.truncf %8 : vector<64x32xf32> to vector<64x32xbf16>
    %cst_14 = arith.constant dense<0.000000e+00> : vector<16x32xf32>
    %10 = tpu.matmul %7, %9, %cst_14 {dimension_numbers = #tpu.dot_dimension_numbers<[1], [0], [0], [1], [0, 0, 1, 1], [], []>} : vector<16x64xbf16>, vector<64x32xbf16>, vector<16x32xf32> -> vector<16x32xf32>
    %c0_15 = arith.constant 0 : index
    %c0_16 = arith.constant 0 : index
    %11 = vector.load %arg6[%c0_15, %c0_16] : memref<1x32xf32, #tpu.memory_space<vmem>>, vector<1x32xf32>
    %12 = vector.broadcast %11 : vector<1x32xf32> to vector<16x32xf32>
    %13 = arith.addf %10, %12 : vector<16x32xf32>
    %14 = math.tanh %13 : vector<16x32xf32>
    %15 = vector.shape_cast %14 : vector<16x32xf32> to vector<2x8x32xf32>
    %16 = arith.truncf %15 : vector<2x8x32xf32> to vector<2x8x32xbf16>
    "tpu.trace_start"() <{level = 10 : i32, message = "bsd,bnd->bsn"}> : () -> ()
    %cst_17 = arith.constant dense<0.000000e+00> : vector<2x16x8xf32>
    %17 = tpu.matmul %5, %16, %cst_17 {dimension_numbers = #tpu.dot_dimension_numbers<[2], [2], [1], [1], [0, 0, 0, 1, 1, 1], [0], [0]>} : vector<2x16x32xbf16>, vector<2x8x32xbf16>, vector<2x16x8xf32> -> vector<2x16x8xf32>
    "tpu.trace_stop"() : () -> ()
    %18 = vector.broadcast %3 : vector<2x16x1xf32> to vector<2x16x8xf32>
    %19 = arith.addf %17, %18 : vector<2x16x8xf32>
    %20 = arith.truncf %2 : vector<2x4x32xf32> to vector<2x4x32xbf16>
    "tpu.trace_start"() <{level = 10 : i32, message = "bsd,bkd->bsk"}> : () -> ()
    %cst_18 = arith.constant dense<0.000000e+00> : vector<2x16x4xf32>
    %21 = tpu.matmul %5, %20, %cst_18 {dimension_numbers = #tpu.dot_dimension_numbers<[2], [2], [1], [1], [0, 0, 0, 1, 1, 1], [0], [0]>} : vector<2x16x32xbf16>, vector<2x4x32xbf16>, vector<2x16x4xf32> -> vector<2x16x4xf32>
    "tpu.trace_stop"() : () -> ()
    %22 = vector.broadcast %4 : f32 to vector<2x16x4xf32>
    %23 = arith.mulf %21, %22 : vector<2x16x4xf32>
    %24 = vector.broadcast %3 : vector<2x16x1xf32> to vector<2x16x4xf32>
    %25 = arith.addf %23, %24 : vector<2x16x4xf32>
    %cst_19 = arith.constant dense<0xFF800000> : vector<2x16xf32>
    %26 = vector.multi_reduction <maximumf>, %19, %cst_19 [2] : vector<2x16x8xf32> to vector<2x16xf32>
    %27 = vector.shape_cast %26 : vector<2x16xf32> to vector<2x16x1xf32>
    %28 = vector.broadcast %27 : vector<2x16x1xf32> to vector<2x16x8xf32>
    %29 = arith.subf %19, %28 : vector<2x16x8xf32>
    %30 = math.exp %29 : vector<2x16x8xf32>
    %cst_20 = arith.constant dense<0.000000e+00> : vector<2x16xf32>
    %31 = vector.multi_reduction <add>, %30, %cst_20 [2] : vector<2x16x8xf32> to vector<2x16xf32>
    %32 = vector.shape_cast %31 : vector<2x16xf32> to vector<2x16x1xf32>
    %33 = tpu.reciprocal %32 {approx = true} : vector<2x16x1xf32> -> vector<2x16x1xf32>
    %34 = vector.broadcast %33 : vector<2x16x1xf32> to vector<2x16x8xf32>
    %35 = arith.mulf %30, %34 : vector<2x16x8xf32>
    %cst_21 = arith.constant dense<0xFF800000> : vector<2x16xf32>
    %36 = vector.multi_reduction <maximumf>, %25, %cst_21 [2] : vector<2x16x4xf32> to vector<2x16xf32>
    %37 = vector.shape_cast %36 : vector<2x16xf32> to vector<2x16x1xf32>
    %38 = vector.broadcast %37 : vector<2x16x1xf32> to vector<2x16x4xf32>
    %39 = arith.subf %25, %38 : vector<2x16x4xf32>
    %40 = math.exp %39 : vector<2x16x4xf32>
    %cst_22 = arith.constant dense<0.000000e+00> : vector<2x16xf32>
    %41 = vector.multi_reduction <add>, %40, %cst_22 [2] : vector<2x16x4xf32> to vector<2x16xf32>
    %42 = tpu.reciprocal %41 : vector<2x16xf32> -> vector<2x16xf32>
    %c0_23 = arith.constant 0 : index
    %c0_24 = arith.constant 0 : index
    %43 = vector.load %arg11[%c0_23, %c0_24] : memref<2x16xf32, #tpu.memory_space<vmem>>, vector<2x16xf32>
    tpu.vector_store %arg11[%c0_23, %c0_24], %42 {strides = array<i32>} : memref<2x16xf32, #tpu.memory_space<vmem>>, vector<2x16xf32>,
    %44 = arith.truncf %35 : vector<2x16x8xf32> to vector<2x16x8xbf16>
    "tpu.trace_start"() <{level = 10 : i32, message = "bsn,bnd->bsd"}> : () -> ()
    %cst_25 = arith.constant dense<0.000000e+00> : vector<2x16x32xf32>
    %45 = tpu.matmul %44, %16, %cst_25 {dimension_numbers = #tpu.dot_dimension_numbers<[2], [1], [1], [2], [0, 0, 0, 1, 1, 2], [0], [0]>} : vector<2x16x8xbf16>, vector<2x8x32xbf16>, vector<2x16x32xf32> -> vector<2x16x32xf32>
    "tpu.trace_stop"() : () -> ()
    %46 = vector.shape_cast %5 : vector<2x16x32xbf16> to vector<32x32xbf16>
    %47 = vector.shape_cast %45 : vector<2x16x32xf32> to vector<32x32xf32>
    %48 = arith.truncf %47 : vector<32x32xf32> to vector<32x32xbf16>
    %c0_26 = arith.constant 0 : index
    %c0_27 = arith.constant 0 : index
    %49 = vector.load %arg7[%c0_26, %c0_27] : memref<32x32xf32, #tpu.memory_space<vmem>>, vector<32x32xf32>
    %50 = arith.truncf %49 : vector<32x32xf32> to vector<32x32xbf16>
    %cst_28 = arith.constant dense<0.000000e+00> : vector<32x32xf32>
    %51 = tpu.matmul %46, %50, %cst_28 {dimension_numbers = #tpu.dot_dimension_numbers<[1], [0], [0], [1], [0, 0, 1, 1], [], []>} : vector<32x32xbf16>, vector<32x32xbf16>, vector<32x32xf32> -> vector<32x32xf32>
    %c0_29 = arith.constant 0 : index
    %c0_30 = arith.constant 0 : index
    %52 = vector.load %arg8[%c0_29, %c0_30] : memref<32x32xf32, #tpu.memory_space<vmem>>, vector<32x32xf32>
    %53 = arith.truncf %52 : vector<32x32xf32> to vector<32x32xbf16>
    %cst_31 = arith.constant dense<0.000000e+00> : vector<32x32xf32>
    %54 = tpu.matmul %48, %53, %cst_31 {dimension_numbers = #tpu.dot_dimension_numbers<[1], [0], [0], [1], [0, 0, 1, 1], [], []>} : vector<32x32xbf16>, vector<32x32xbf16>, vector<32x32xf32> -> vector<32x32xf32>
    %55 = arith.addf %51, %54 : vector<32x32xf32>
    %c0_32 = arith.constant 0 : index
    %c0_33 = arith.constant 0 : index
    %56 = vector.load %arg9[%c0_32, %c0_33] : memref<1x32xf32, #tpu.memory_space<vmem>>, vector<1x32xf32>
    %57 = vector.broadcast %56 : vector<1x32xf32> to vector<32x32xf32>
    %58 = arith.addf %55, %57 : vector<32x32xf32>
    %59 = math.tanh %58 : vector<32x32xf32>
    %60 = vector.shape_cast %59 : vector<32x32xf32> to vector<2x16x32xf32>
    %c0_34 = arith.constant 0 : index
    %c0_35 = arith.constant 0 : index
    %c0_36 = arith.constant 0 : index
    %61 = vector.load %arg10[%c0_34, %c0_35, %c0_36] : memref<2x16x32xf32, #tpu.memory_space<vmem>>, vector<2x16x32xf32>
    tpu.vector_store %arg10[%c0_34, %c0_35, %c0_36], %60 {strides = array<i32>} : memref<2x16x32xf32, #tpu.memory_space<vmem>>, vector<2x16x32xf32>,
    return
  }
  func.func @transform_0(%arg0: i32) -> (i32, i32, i32) {
    %c0_i32 = arith.constant 0 : i32
    %c0_i32_0 = arith.constant 0 : i32
    %c0_i32_1 = arith.constant 0 : i32
    return %arg0, %c0_i32, %c0_i32_0 : i32, i32, i32
  }
  func.func @transform_1(%arg0: i32) -> (i32, i32, i32) {
    %c0_i32 = arith.constant 0 : i32
    %c0_i32_0 = arith.constant 0 : i32
    %c0_i32_1 = arith.constant 0 : i32
    return %arg0, %c0_i32, %c0_i32_0 : i32, i32, i32
  }
  func.func @transform_2(%arg0: i32) -> (i32, i32, i32) {
    %c0_i32 = arith.constant 0 : i32
    %c0_i32_0 = arith.constant 0 : i32
    %c0_i32_1 = arith.constant 0 : i32
    return %arg0, %c0_i32, %c0_i32_0 : i32, i32, i32
  }
  func.func @transform_3(%arg0: i32) -> (i32, i32, i32) {
    %c0_i32 = arith.constant 0 : i32
    %c0_i32_0 = arith.constant 0 : i32
    %c0_i32_1 = arith.constant 0 : i32
    return %arg0, %c0_i32, %c0_i32_0 : i32, i32, i32
  }
  func.func @transform_4(%arg0: i32) -> (i32, i32) {
    %c0_i32 = arith.constant 0 : i32
    %c0_i32_0 = arith.constant 0 : i32
    %c0_i32_1 = arith.constant 0 : i32
    return %c0_i32, %c0_i32_0 : i32, i32
  }
  func.func @transform_5(%arg0: i32) -> (i32, i32) {
    %c0_i32 = arith.constant 0 : i32
    %c0_i32_0 = arith.constant 0 : i32
    %c0_i32_1 = arith.constant 0 : i32
    return %c0_i32, %c0_i32_0 : i32, i32
  }
  func.func @transform_6(%arg0: i32) -> (i32, i32) {
    %c0_i32 = arith.constant 0 : i32
    %c0_i32_0 = arith.constant 0 : i32
    %c0_i32_1 = arith.constant 0 : i32
    return %c0_i32, %c0_i32_0 : i32, i32
  }
  func.func @transform_7(%arg0: i32) -> (i32, i32) {
    %c0_i32 = arith.constant 0 : i32
    %c0_i32_0 = arith.constant 0 : i32
    %c0_i32_1 = arith.constant 0 : i32
    return %c0_i32, %c0_i32_0 : i32, i32
  }
  func.func @transform_8(%arg0: i32) -> (i32, i32) {
    %c0_i32 = arith.constant 0 : i32
    %c0_i32_0 = arith.constant 0 : i32
    %c0_i32_1 = arith.constant 0 : i32
    return %c0_i32, %c0_i32_0 : i32, i32
  }
  func.func @transform_9(%arg0: i32) -> (i32, i32, i32) {
    %c0_i32 = arith.constant 0 : i32
    %c0_i32_0 = arith.constant 0 : i32
    %c0_i32_1 = arith.constant 0 : i32
    return %arg0, %c0_i32, %c0_i32_0 : i32, i32, i32
  }
  func.func @transform_10(%arg0: i32) -> (i32, i32) {
    %c0_i32 = arith.constant 0 : i32
    %c0_i32_0 = arith.constant 0 : i32
    return %arg0, %c0_i32 : i32, i32
  }
}

</mosaic_0001>

<bundles_post_ra>
// kernel: tpu_custom_call.1
= control target key start
LH: loop header
LB: loop body
LE: loop exit
PB: predicated region body
PF: predicated region fallthrough
CT: control target
= control target key end

     0   :  { %16 = vsyncpa [#allocation3], 0  ;;  %s956_s0 = inlined_call_operand.vmem [shape: f32[2,16,32], index: 0, kind: input, shape index: {}]   ;;  %s957_s1 = inlined_call_operand.hbm [shape: f32[2,8,64], index: 1, kind: input, shape index: {}]   ;;  %s958_s2 = inlined_call_operand.hbm [shape: f32[2,4,32], index: 2, kind: input, shape index: {}]   ;;  %s959_s3 = inlined_call_operand.vmem [shape: f32[2,16,1], index: 3, kind: input, shape index: {}]   ;;  %s960_s4 = inlined_call_operand.vmem [shape: f32[64,32], index: 4, kind: input, shape index: {}]   ;;  %s961_s5 = inlined_call_operand.vmem [shape: f32[1,32], index: 5, kind: input, shape index: {}]   ;;  %s962_s6 = inlined_call_operand.vmem [shape: f32[32,32], index: 6, kind: input, shape index: {}]   ;;  %s963_s7 = inlined_call_operand.vmem [shape: f32[32,32], index: 7, kind: input, shape index: {}]   ;;  %s964_s8 = inlined_call_operand.vmem [shape: f32[1,32], index: 8, kind: input, shape index: {}]   ;;  %s965_s9 = inlined_call_operand.hbm [shape: f32[2,16,32], index: 9, kind: output, shape index: {0}]   ;;  %s966_s10 = inlined_call_operand.hbm [shape: f32[2,16], index: 10, kind: output, shape index: {1}]  }
   0x1   :  { %17 = vsyncpa [#allocation6], 0 }
   0x2   :  { %18 = vsyncpa [#allocation4], 0 }
   0x3   :  { %19 = vsyncpa [#allocation9], 0  ;;  %s26_s15 = sshll.u32 %s957_s1, 4  ;;  %s733_s16 = smov [#allocation2]   ;;  %s27_s15 = int_to_ptr.hbm [resolvable:$true] %s26_s15 }
   0x4   :  { %s28_s17 = sshll.u32 %s733_s16, 4  ;;  %s39_s20 = sshll.u32 %s958_s2, 4  ;;  %s29_s17 = int_to_ptr.vmem [resolvable:$true] %s28_s17  ;;  %s40_s20 = int_to_ptr.hbm [resolvable:$true] %s39_s20 }
   0x5   :  { %s734_s21 = smov 128   ;;  %s735_s22 = smov 8  }
   0x6   :  { %34 = dma.hbm_to_vmem [thread:$0]  %s27_s15, 256, %s29_s17, [#allocation3], %s734_s21, %s734_s21, %s735_s22  }
   0x7   :  { %s736_s23 = smov [#allocation5]   ;;  %s737_s25 = smov 64  }
   0x8   :  { %s41_s24 = sshll.u32 %s736_s23, 4  ;;  %s738_s1 = smov 4   ;;  %s42_s24 = int_to_ptr.vmem [resolvable:$true] %s41_s24 }
   0x9   :  { %47 = dma.hbm_to_vmem [thread:$0]  %s40_s20, 128, %s42_s24, [#allocation6], %s737_s25, %s737_s25, %s738_s1  }
   0xa   :  { %725 = dma.done.wait [#allocation3], 256  }
   0xb   :  { %726 = vsyncadd [#allocation3], 4294967040 }
   0xc   :  { %727 = dma.done.wait [#allocation6], 128  }
   0xd   :  { %728 = vsyncadd [#allocation6], 4294967168  ;;  %v92_v0 = vld [vmem:[%s960_s4 + $0x30] sm:$0xff]  ;;  %v93_v1 = vld [vmem:[%s960_s4 + $0x38] sm:$0xff]  ;;  %vm102_vm0 = vcmask 523264   ;;  %vm149_vm1 = vcmask 261120  }
   0xe   :  { %v90_v2 = vld [vmem:[%s960_s4 + $0x20] sm:$0xff]  ;;  %v97_v3 = vpack.c.bf16 %v93_v1, %v92_v0  ;;  %v91_v4 = vld [vmem:[%s960_s4 + $0x28] sm:$0xff]  ;;  %v88_v6 = vld [vmem:[%s960_s4 + $0x10] sm:$0xff]  ;;  %v739_v31 = vmov 0   ;;  %vm408_vm2 = vcmask 1043456   ;;  %vm239_vm3 = vcmask 64512  }
   0xf   :  { %v96_v5 = vpack.c.bf16 %v91_v4, %v90_v2  ;;  %v89_v7 = vld [vmem:[%s960_s4 + $0x18] sm:$0xff]  ;;  %v86_v9 = vld [vmem:[%s960_s4] sm:$0xff]  ;;  %v87_v10 = vld [vmem:[%s960_s4 + $0x8] sm:$0xff]  ;;  %582 = vset.pattern.permute.xlu1 %v739_v31  ;;  %581 = vset.pattern.permute.xlu0 %v739_v31  ;;  %vm284_vm4 = vcmask 31744   ;;  %s543_s11 = sshll.u32 %s966_s10, 4  ;;  %s529_s15 = sshll.u32 %s965_s9, 4  ;;  %s544_s11 = int_to_ptr.hbm [resolvable:$true] %s543_s11  ;;  %s530_s15 = int_to_ptr.hbm [resolvable:$true] %s529_s15 }
  0x10   :  { %110 = vmatpush.bf16.msra.mxu0 %v97_v3  ;;  %v95_v8 = vpack.c.bf16 %v89_v7, %v88_v6  ;;  %v94_v11 = vpack.c.bf16 %v87_v10, %v86_v9  ;;  %v73_v12 = vld [vmem:[#allocation2] sm:$0xff]  ;;  %v74_v13 = vld [vmem:[#allocation2 + $0x8] sm:$0xff]  ;;  %v75_v15 = vld [vmem:[#allocation5] sm:$0xf] }
  0x11   :  { %v85_v14 = vpack.c.bf16 %v74_v13, %v73_v12  ;;  %v195_v16 = vpack.c.bf16 %v75_v15, %v75_v15  ;;  %v69_v18 = vld [vmem:[%s956_s0] sm:$0xff]  ;;  %v70_v19 = vld [vmem:[%s956_s0 + $0x8] sm:$0xff]  ;;  %v76_v25 = vld [vmem:[#allocation5 + $0x4] sm:$0xf] }
  0x12   :  { %v81_v20 = vpack.c.bf16 %v69_v18, %v69_v18  ;;  %v82_v21 = vpack.c.bf16 %v70_v19, %v70_v19  ;;  %v196_v26 = vpack.c.bf16 %v76_v25, %v76_v25  ;;  %v71_v27 = vld [vmem:[%s956_s0 + $0x10] sm:$0xff]  ;;  %v72_v28 = vld [vmem:[%s956_s0 + $0x18] sm:$0xff]  ;;  %v583_v36 = vld [vmem:[%s961_s5] ss:$0 sm:$0xff] }
  0x13   :  { %v198_v17 = vsel %vm149_vm1, %v195_v16, 0  ;;  %v83_v29 = vpack.c.bf16 %v71_v27, %v71_v27  ;;  %v84_v30 = vpack.c.bf16 %v72_v28, %v72_v28  ;;  %v77_v39 = vld [vmem:[%s959_s3] sm:$0xff]  ;;  %v79_v40 = vld [vmem:[%s959_s3 + $0x10] sm:$0xff]  ;;  %v78_v45 = vld [vmem:[%s959_s3 + $0x8] sm:$0xff] }
  0x14   :  { %111 = vmatpush.bf16.msra.mxu0 %v96_v5  ;;  %207 = vmatpush.bf16.xpose.msra.mxu3 %v198_v17  ;;  %v146_v22 = vunpack.c.l.b16 %v81_v20  ;;  %v147_v23 = vunpack.c.l.b16 %v82_v21  ;;  %v215_v32 = vsel %vm149_vm1, %v196_v26, 0  ;;  %v80_v46 = vld [vmem:[%s959_s3 + $0x18] sm:$0xff] }
  0x15   :  { %224 = vmatpush.bf16.xpose.msra.mxu1 %v215_v32  ;;  %v172_v33 = vunpack.c.l.b16 %v83_v29  ;;  %v173_v34 = vunpack.c.l.b16 %v84_v30  ;;  %126 = vperm.xlu1 %582, %v77_v39  }
  0x16   :  { %v837_v24 = vpack.c.b16 %v147_v23, %v146_v22  ;;  %136 = vperm.xlu0 %581, %v79_v40  }
  0x17   :  { %v848_v35 = vpack.c.b16 %v173_v34, %v172_v33 }
  0x18   :  { %112 = vmatpush.bf16.msra.mxu0 %v95_v8 }
  0x1b   :  { %562 = vmatmul.msk.bf16.vlgmr.msra.gmra.mxu3 %vm149_vm1, %v837_v24 }
  0x1c   :  { %113 = vmatpush.bf16.msra.mxu0 %v94_v11  ;;  %563 = vmatmul.msk.bf16.vlgmr.msra.gmra.mxu1 %vm149_vm1, %v848_v35 }
  0x1d   :  { %131 = vperm.xlu1 %582, %v78_v45  }
  0x1e   :  { %141 = vperm.xlu0 %581, %v80_v46  }
  0x1f   :  { %559 = vmatmul.msk.bf16.vlgmr.msra.gmra.mxu0 %vm102_vm0, %v85_v14 }
  0x87   :  { %v873_v53 = vpop.permute.xlu1 %126 }
  0x88   :  { %v137_v56 = vpop.permute.xlu0 %136 }
  0x8f   :  { %v877_v61 = vpop.permute.xlu1 %131 }
  0x90   :  { %v142_v3 = vpop.permute.xlu0 %141 }
  0x99   :  { %v226_v54 = vpop.f32.mrf.mxu1 }
  0x9a   :  { %v233_v58 = vmul.f32 0.17677669, %v226_v54  ;;  %v454_v54 = vld [vmem:[%s962_s6 + $0x18] sm:$0xff] }
  0x9c   :  { %v115_v37 = vpop.f32.mrf.mxu0  ;;  %v237_v60 = vadd.f32 %v233_v58, %v137_v56 }
  0x9d   :  { %v116_v38 = vadd.f32 %v583_v36, %v115_v37 }
  0x9e   :  { %v291_v1 = vsel %vm284_vm4, %v237_v60, -inf }
  0x9f   :  { %585 = vtanh.f32 %v116_v38  ;;  %v209_v38 = vpop.f32.mrf.mxu3 }
  0xa0   :  { %v231_v40 = vmul.f32 0.17677669, %v209_v38 }
  0xa1   :  { %v228_v62 = vpop.f32.mrf.mxu1 }
  0xa2   :  { %v234_v2 = vmul.f32 0.17677669, %v228_v62 }
  0xa4   :  { %v117_v41 = vpop.f32.mrf.mxu0  ;;  %v882_v5 = vadd.f32 %v234_v2, %v142_v3 }
  0xa5   :  { %v586_v42 = vpop.eup %585  ;;  %v118_v43 = vadd.f32 %v583_v36, %v117_v41 }
  0xa6   :  { %v122_v44 = vpack.c.bf16 %v586_v42, %v586_v42  ;;  %v294_v8 = vsel %vm284_vm4, %v882_v5, -inf  ;;  %v235_v42 = vadd.f32 %v231_v40, %v873_v53 }
  0xa7   :  { %587 = vtanh.f32 %v118_v43  ;;  %v211_v43 = vpop.f32.mrf.mxu3 }
  0xa8   :  { %v154_v47 = vsel %vm149_vm1, %v122_v44, 0  ;;  %v409_v52 = vsel %vm408_vm2, %v122_v44, 0  ;;  %v232_v44 = vmul.f32 0.17677669, %v211_v43  ;;  %v285_v45 = vsel %vm284_vm4, %v235_v42, -inf }
  0xa9   :  { %163 = vmatpush.bf16.xpose.msra.mxu2 %v154_v47 }
  0xaa   :  { %v236_v46 = vadd.f32 %v232_v44, %v877_v61 }
  0xac   :  { %v288_v47 = vsel %vm284_vm4, %v236_v46, -inf }
  0xad   :  { %v588_v48 = vpop.eup %587 }
  0xae   :  { %v123_v49 = vpack.c.bf16 %v588_v48, %v588_v48 }
  0xb0   :  { %560 = vmatmul.msk.bf16.vlgmr.msra.gmra.mxu2 %vm149_vm1, %v837_v24  ;;  %v179_v50 = vsel %vm149_vm1, %v123_v49, 0  ;;  %v433_v51 = vsel %vm408_vm2, %v123_v49, 0 }
  0xb1   :  { %188 = vmatpush.bf16.xpose.msrb.mxu2 %v179_v50  ;;  %442 = vmatpush.bf16.msrb.mxu3 %v433_v51 }
  0xb9   :  { %418 = vmatpush.bf16.msra.mxu2 %v409_v52 }
  0xc0   :  { %561 = vmatmul.msk.bf16.vlgmr.msrb.gmra.mxu2 %vm149_vm1, %v848_v35 }
 0x133   :  { %v165_v55 = vpop.f32.mrf.mxu2 }
 0x134   :  { %v166_v57 = vadd.f32 %v165_v55, %v873_v53  ;;  %v453_v53 = vld [vmem:[%s962_s6 + $0x10] sm:$0xff]  ;;  %v451_v55 = vld [vmem:[%s962_s6] sm:$0xff] }
 0x136   :  { %v240_v59 = vsel %vm239_vm3, %v166_v57, -inf }
 0x137   :  { %241 = vmax.xlane.f32.xlu0 %v240_v59 }
 0x13b   :  { %v167_v63 = vpop.f32.mrf.mxu2 }
 0x13c   :  { %v168_v0 = vadd.f32 %v167_v63, %v877_v61 }
 0x13e   :  { %v243_v4 = vsel %vm239_vm3, %v168_v0, -inf }
 0x13f   :  { %244 = vmax.xlane.f32.xlu1 %v243_v4  ;;  %292 = vmax.xlane.f32.xlu0 %v291_v1 }
 0x143   :  { %v190_v6 = vpop.f32.mrf.mxu2 }
 0x144   :  { %v191_v7 = vadd.f32 %v190_v6, %v137_v56  ;;  %v456_v56 = vpack.c.bf16 %v454_v54, %v453_v53 }
 0x146   :  { %v246_v9 = vsel %vm239_vm3, %v191_v7, -inf  ;;  %494 = vmatpush.bf16.msrb.mxu1 %v456_v56 }
 0x147   :  { %247 = vmax.xlane.f32.xlu2 %v246_v9  ;;  %295 = vmax.xlane.f32.xlu1 %v294_v8 }
 0x14b   :  { %v192_v10 = vpop.f32.mrf.mxu2 }
 0x14c   :  { %v193_v11 = vadd.f32 %v192_v10, %v142_v3 }
 0x14e   :  { %v249_v12 = vsel %vm239_vm3, %v193_v11, -inf }
 0x14f   :  { %250 = vmax.xlane.f32.xlu2 %v249_v12 }
 0x1aa   :  { %v242_v13 = vpop.xlane.xlu0 %241 }
 0x1ab   :  { %v252_v14 = vsub.f32 %v166_v57, %v242_v13  ;;  %v452_v57 = vld [vmem:[%s962_s6 + $0x8] sm:$0xff] }
 0x1ac   :  { %v455_v62 = vpack.c.bf16 %v452_v57, %v451_v55 }
 0x1ad   :  { %v256_v15 = vmul.f32 1.442695, %v252_v14 }
 0x1ae   :  { %495 = vmatpush.bf16.msrb.mxu1 %v455_v62 }
 0x1af   :  { %589 = vpow2.f32 %v256_v15 }
 0x1b1   :  { %568 = vmatmul.msk.bf16.vlgmr.msrb.gmra.mxu1 %vm149_vm1, %v837_v24 }
 0x1b2   :  { %v293_v16 = vpop.xlane.xlu0 %292  ;;  %v245_v27 = vpop.xlane.xlu1 %244 }
 0x1b3   :  { %v299_v17 = vsub.f32 %v237_v60, %v293_v16  ;;  %v253_v31 = vsub.f32 %v168_v0, %v245_v27  ;;  %v459_v27 = vld [vmem:[%s963_s7 + $0x10] sm:$0xff] }
 0x1b5   :  { %v590_v18 = vpop.eup %589  ;;  %v305_v19 = vmul.f32 1.442695, %v299_v17  ;;  %v258_v34 = vmul.f32 1.442695, %v253_v31 }
 0x1b6   :  { %v264_v20 = vsel %vm239_vm3, %v590_v18, 0.0 }
 0x1b7   :  { %265 = vadd.xlane.f32.xlu2 %v264_v20  ;;  %591 = vpow2.f32 %v305_v19 }
 0x1ba   :  { %v248_v21 = vpop.xlane.xlu2 %247 }
 0x1bb   :  { %v254_v22 = vsub.f32 %v191_v7, %v248_v21  ;;  %v296_v7 = vpop.xlane.xlu1 %295 }
 0x1bc   :  { %v300_v13 = vsub.f32 %v882_v5, %v296_v7 }
 0x1bd   :  { %v260_v23 = vmul.f32 1.442695, %v254_v22  ;;  %v592_v25 = vpop.eup %591 }
 0x1be   :  { %v315_v26 = vsel %vm284_vm4, %v592_v25, 0.0 }
 0x1bf   :  { %593 = vpow2.f32 %v260_v23  ;;  %316 = vadd.xlane.f32.xlu1 %v315_v26 }
 0x1c1   :  { %569 = vmatmul.msk.bf16.gmra.mxu1 %vm149_vm1, %v848_v35  ;;  %v457_v35 = vld [vmem:[%s963_s7] sm:$0xff] }
 0x1c2   :  { %v251_v28 = vpop.xlane.xlu2 %250 }
 0x1c3   :  { %v255_v29 = vsub.f32 %v193_v11, %v251_v28  ;;  %v460_v28 = vld [vmem:[%s963_s7 + $0x18] sm:$0xff] }
 0x1c5   :  { %v594_v30 = vpop.eup %593  ;;  %v262_v32 = vmul.f32 1.442695, %v255_v29  ;;  %v462_v29 = vpack.c.bf16 %v460_v28, %v459_v27 }
 0x1c6   :  { %v270_v33 = vsel %vm239_vm3, %v594_v30, 0.0 }
 0x1c7   :  { %595 = vpow2.f32 %v262_v32  ;;  %271 = vadd.xlane.f32.xlu2 %v270_v33  ;;  %570 = vmatpush.bf16.msra.mxu3 %v462_v29 }
 0x1c8   :  { %597 = vpow2.f32 %v258_v34  ;;  %475 = vmatpush.bf16.msrb.mxu0 %v462_v29 }
 0x1cd   :  { %v596_v36 = vpop.eup %595 }
 0x1ce   :  { %v273_v37 = vsel %vm239_vm3, %v596_v36, 0.0  ;;  %v598_v39 = vpop.eup %597 }
 0x1cf   :  { %274 = vadd.xlane.f32.xlu2 %v273_v37  ;;  %v267_v41 = vsel %vm239_vm3, %v598_v39, 0.0 }
 0x1d7   :  { %268 = vadd.xlane.f32.xlu2 %v267_v41 }
 0x1df   :  { %286 = vmax.xlane.f32.xlu2 %v285_v45 }
 0x1e7   :  { %289 = vmax.xlane.f32.xlu2 %v288_v47 }
 0x22a   :  { %v266_v48 = vpop.xlane.xlu2 %265 }
 0x232   :  { %v317_v32 = vpop.xlane.xlu1 %316 }
 0x233   :  { %vm354_vm6 = vweird.f32 %v317_v32 }
 0x23a   :  { %v272_v49 = vpop.xlane.xlu2 %271 }
 0x23b   :  { %599 = vrcp.f32 %v272_v49  ;;  %v360_v49 = vand.u32 2147483648, %v317_v32 }
 0x23d   :  { %v361_v57 = vor.u32 1.1754944e-38, %v360_v49 }
 0x241   :  { %v600_v51 = vpop.eup %599 }
 0x242   :  { %v275_v50 = vpop.xlane.xlu2 %274  ;;  %v282_v52 = vmul.f32 %v600_v51, %v594_v30  ;;  %v458_v30 = vld [vmem:[%s963_s7 + $0x8] sm:$0xff]  ;;  %v358_v51 = vand.u32 2147483647, %v317_v32  ;;  %s740_s7 = smov [#allocation8]  }
 0x243   :  { %601 = vrcp.f32 %v275_v50  ;;  %v461_v31 = vpack.c.bf16 %v458_v30, %v457_v35  ;;  %s541_s29 = sshll.u32 %s740_s7, 4  ;;  %v497_v35 = vpop.f32.mrf.mxu1  ;;  %s542_s29 = int_to_ptr.vmem [resolvable:$true] %s541_s29 }
 0x244   :  { %603 = vrcp.f32 %v266_v48  ;;  %v398_v59 = vpack.c.bf16 %v282_v52, %v282_v52  ;;  %v381_v48 = vlaneseq  ;;  %vm359_vm8 = vcmp.eq.f32.partialorder %v358_v51, 8.507059e+37 }
 0x245   :  { %571 = vmatpush.bf16.msra.mxu3 %v461_v31  ;;  %476 = vmatpush.bf16.msrb.mxu0 %v461_v31 }
 0x246   :  { %v427_v2 = vunpack.c.l.b16 %v398_v59  ;;  %v382_v56 = vand.u32 127, %v381_v48 }
 0x249   :  { %v602_v58 = vpop.eup %601 }
 0x24a   :  { %v283_v60 = vmul.f32 %v602_v58, %v596_v36  ;;  %v269_v61 = vpop.xlane.xlu2 %268  ;;  %v604_v63 = vpop.eup %603 }
 0x24b   :  { %605 = vrcp.f32 %v269_v61  ;;  %v280_v1 = vmul.f32 %v604_v63, %v590_v18  ;;  %v307_v18 = vmul.f32 1.442695, %v300_v13  ;;  %v499_v30 = vpop.f32.mrf.mxu1 }
 0x24c   :  { %v399_v0 = vpack.c.bf16 %v283_v60, %v283_v60 }
 0x24d   :  { %v396_v8 = vpack.c.bf16 %v280_v1, %v280_v1 }
 0x24e   :  { %v428_v3 = vunpack.c.l.b16 %v399_v0 }
 0x24f   :  { %v402_v15 = vunpack.c.l.b16 %v396_v8 }
 0x250   :  { %v429_v4 = vpack.c.b16 %v428_v3, %v427_v2 }
 0x251   :  { %v606_v6 = vpop.eup %605 }
 0x252   :  { %v281_v9 = vmul.f32 %v606_v6, %v598_v39  ;;  %565 = vmatmul.msk.bf16.vlgmr.msrb.gmra.mxu3 %vm239_vm3, %v429_v4  ;;  %v287_v10 = vpop.xlane.xlu2 %286 }
 0x253   :  { %v297_v11 = vsub.f32 %v235_v42, %v287_v10  ;;  %v502_v31 = vpop.f32.mrf.mxu1 }
 0x254   :  { %v397_v12 = vpack.c.bf16 %v281_v9, %v281_v9 }
 0x255   :  { %v301_v14 = vmul.f32 1.442695, %v297_v11 }
 0x256   :  { %v403_v16 = vunpack.c.l.b16 %v397_v12 }
 0x257   :  { %607 = vpow2.f32 %v301_v14  ;;  %v384_v14 = vadd.s32 4294967288, %v382_v56 }
 0x258   :  { %v404_v17 = vpack.c.b16 %v403_v16, %v402_v15  ;;  %609 = vpow2.f32 %v307_v18 }
 0x25a   :  { %564 = vmatmul.msk.bf16.vlgmr.msra.gmra.mxu2 %vm239_vm3, %v404_v17  ;;  %v290_v19 = vpop.xlane.xlu2 %289 }
 0x25b   :  { %v298_v24 = vsub.f32 %v236_v46, %v290_v19 }
 0x25d   :  { %v608_v20 = vpop.eup %607  ;;  %v303_v21 = vmul.f32 1.442695, %v298_v24 }
 0x25e   :  { %v309_v22 = vsel %vm284_vm4, %v608_v20, 0.0  ;;  %v610_v5 = vpop.eup %609 }
 0x25f   :  { %611 = vpow2.f32 %v303_v21  ;;  %310 = vadd.xlane.f32.xlu2 %v309_v22  ;;  %v318_v25 = vsel %vm284_vm4, %v610_v5, 0.0 }
 0x260   :  { %613 = vrcp.f32 %v317_v32 }
 0x265   :  { %v612_v23 = vpop.eup %611 }
 0x266   :  { %v312_v26 = vsel %vm284_vm4, %v612_v23, 0.0  ;;  %v614_v33 = vpop.eup %613 }
 0x267   :  { %319 = vadd.xlane.f32.xlu2 %v318_v25  ;;  %313 = vadd.xlane.f32.xlu0 %v312_v26  ;;  %v350_v34 = vmul.f32 %v614_v33, %v317_v32  ;;  %vm355_vm5 = vweird.f32 %v614_v33  ;;  %v584_v32 = vld [vmem:[%s964_s8] ss:$0 sm:$0xff]  ;;  %s741_s8 = smov [#allocation7]  }
 0x268   :  { %vm356_vm7 = vmor %vm354_vm6, %vm355_vm5  ;;  %vm386_vm6 = vcmask 130112   ;;  %s527_s10 = sshll.u32 %s741_s8, 4  ;;  %s528_s10 = int_to_ptr.vmem [resolvable:$true] %s527_s10 }
 0x269   :  { %v351_v37 = vsub.f32 1.0, %v350_v34 }
 0x26b   :  { %v352_v40 = vmul.f32 %v614_v33, %v351_v37 }
 0x26d   :  { %v353_v45 = vadd.f32 %v614_v33, %v352_v40  ;;  %v504_v40 = vpop.f32.mrf.mxu1 }
 0x26f   :  { %v357_v54 = vsel %vm356_vm7, %v614_v33, %v353_v45  ;;  %vm391_vm7 = vcmask 1041409  }
 0x270   :  { %v362_v61 = vsel %vm359_vm8, %v361_v57, %v357_v54  ;;  %vm394_vm8 = vcmask 123904  }
 0x271   :  { %v388_v22 = vperm.slane %v362_v61, %v382_v56 }
 0x2d2   :  { %v311_v36 = vpop.xlane.xlu2 %310 }
 0x2d3   :  { %615 = vrcp.f32 %v311_v36  ;;  %vm326_vm10 = vweird.f32 %v311_v36  ;;  %v332_v62 = vand.u32 2147483648, %v311_v36  ;;  %v330_v0 = vand.u32 2147483647, %v311_v36 }
 0x2d5   :  { %v444_v38 = vpop.f32.mrf.mxu3  ;;  %v333_v13 = vor.u32 1.1754944e-38, %v332_v62  ;;  %vm331_vm15 = vcmp.eq.f32.partialorder %v330_v0, 8.507059e+37 }
 0x2d9   :  { %v616_v39 = vpop.eup %615 }
 0x2da   :  { %v322_v41 = vmul.f32 %v616_v39, %v311_v36  ;;  %v320_v42 = vpop.xlane.xlu2 %319  ;;  %v314_v43 = vpop.xlane.xlu0 %313  ;;  %vm327_vm9 = vweird.f32 %v616_v39 }
 0x2db   :  { %617 = vrcp.f32 %v320_v42  ;;  %v372_v1 = vand.u32 2147483647, %v320_v42  ;;  %v374_v2 = vand.u32 2147483648, %v320_v42  ;;  %vm932_vm11 = vmor %vm326_vm10, %vm327_vm9  ;;  %v346_v8 = vand.u32 2147483648, %v314_v43 }
 0x2dc   :  { %v323_v44 = vsub.f32 1.0, %v322_v41  ;;  %619 = vrcp.f32 %v314_v43  ;;  %v344_v12 = vand.u32 2147483647, %v314_v43  ;;  %vm368_vm14 = vweird.f32 %v320_v42 }
 0x2dd   :  { %v420_v46 = vpop.f32.mrf.mxu2  ;;  %v446_v47 = vpop.f32.mrf.mxu3  ;;  %v375_v16 = vor.u32 1.1754944e-38, %v374_v2  ;;  %vm340_vm2 = vweird.f32 %v314_v43  ;;  %vm373_vm3 = vcmp.eq.f32.partialorder %v372_v1, 8.507059e+37  ;;  %v347_v24 = vor.u32 1.1754944e-38, %v346_v8 }
 0x2de   :  { %v450_v50 = vpack.c.bf16 %v446_v47, %v444_v38  ;;  %v324_v52 = vmul.f32 %v616_v39, %v323_v44  ;;  %vm345_vm5 = vcmp.eq.f32.partialorder %v344_v12, 8.507059e+37 }
 0x2e0   :  { %567 = vmatmul.msk.bf16.vlgmr.msra.gmra.mxu3 %vm149_vm1, %v450_v50  ;;  %v325_v59 = vadd.f32 %v616_v39, %v324_v52 }
 0x2e1   :  { %v618_v53 = vpop.eup %617 }
 0x2e2   :  { %v620_v55 = vpop.eup %619  ;;  %v364_v58 = vmul.f32 %v618_v53, %v320_v42  ;;  %vm369_vm12 = vweird.f32 %v618_v53  ;;  %v329_v10 = vsel %vm932_vm11, %v616_v39, %v325_v59 }
 0x2e3   :  { %v336_v60 = vmul.f32 %v620_v55, %v314_v43  ;;  %vm341_vm13 = vweird.f32 %v620_v55  ;;  %vm370_vm0 = vmor %vm368_vm14, %vm369_vm12  ;;  %v334_v18 = vsel %vm331_vm15, %v333_v13, %v329_v10 }
 0x2e4   :  { %v365_v63 = vsub.f32 1.0, %v364_v58  ;;  %vm342_vm4 = vmor %vm340_vm2, %vm341_vm13  ;;  %v383_v25 = vperm.slane %v334_v18, %v382_v56 }
 0x2e5   :  { %v337_v3 = vsub.f32 1.0, %v336_v60  ;;  %v422_v4 = vpop.f32.mrf.mxu2 }
 0x2e6   :  { %v366_v7 = vmul.f32 %v618_v53, %v365_v63  ;;  %v449_v9 = vpack.c.bf16 %v422_v4, %v420_v46 }
 0x2e7   :  { %v338_v11 = vmul.f32 %v620_v55, %v337_v3 }
 0x2e8   :  { %v367_v15 = vadd.f32 %v618_v53, %v366_v7  ;;  %566 = vmatmul.msk.bf16.vlgmr.msrb.gmra.mxu0 %vm149_vm1, %v449_v9 }
 0x2e9   :  { %v339_v17 = vadd.f32 %v620_v55, %v338_v11 }
 0x2ea   :  { %v371_v19 = vsel %vm370_vm0, %v618_v53, %v367_v15 }
 0x2eb   :  { %v376_v20 = vsel %vm373_vm3, %v375_v16, %v371_v19  ;;  %v343_v21 = vsel %vm342_vm4, %v620_v55, %v339_v17 }
 0x2ec   :  { %v389_v5 = vperm.slane %v376_v20, %v384_v14  ;;  %v348_v23 = vsel %vm345_vm5, %v347_v24, %v343_v21 }
 0x2ed   :  { %v385_v26 = vperm.slane %v348_v23, %v384_v14 }
 0x2ee   :  { %v390_v27 = vsel %vm386_vm6, %v389_v5, %v388_v22 }
 0x2ef   :  { %v387_v28 = vsel %vm386_vm6, %v385_v26, %v383_v25 }
 0x2f0   :  { %v392_v29 = vsel %vm391_vm7, %v390_v27, %v387_v28 }
 0x2f1   :  { %395 = vst.msk [vmem:[#allocation8] sm:$0x3] %vm394_vm8, %v392_v29 }
 0x2f2   :  { %546 = dma.vmem_to_hbm [thread:$0]  %s542_s29, 32, %s544_s11, [#allocation9]  }
 0x363   :  { %v483_v33 = vpop.f32.mrf.mxu3 }
 0x364   :  { %v503_v34 = vadd.f32 %v502_v31, %v483_v33 }
 0x365   :  { %v478_v36 = vpop.f32.mrf.mxu0 }
 0x366   :  { %v513_v37 = vadd.f32 %v584_v32, %v503_v34  ;;  %v498_v38 = vadd.f32 %v497_v35, %v478_v36 }
 0x368   :  { %621 = vtanh.f32 %v513_v37  ;;  %v511_v39 = vadd.f32 %v584_v32, %v498_v38 }
 0x36a   :  { %623 = vtanh.f32 %v511_v39 }
 0x36b   :  { %v485_v41 = vpop.f32.mrf.mxu3 }
 0x36c   :  { %v505_v42 = vadd.f32 %v504_v40, %v485_v41 }
 0x36d   :  { %v480_v43 = vpop.f32.mrf.mxu0 }
 0x36e   :  { %v622_v44 = vpop.eup %621  ;;  %v514_v45 = vadd.f32 %v584_v32, %v505_v42  ;;  %v500_v46 = vadd.f32 %v499_v30, %v480_v43 }
 0x36f   :  { %521 = vst.msk [vmem:[#allocation7 + $0x10] sm:$0xff] %vm149_vm1, %v622_v44 }
 0x370   :  { %v624_v47 = vpop.eup %623  ;;  %625 = vtanh.f32 %v514_v45  ;;  %v512_v48 = vadd.f32 %v584_v32, %v500_v46 }
 0x371   :  { %519 = vst.msk [vmem:[#allocation7] sm:$0xff] %vm149_vm1, %v624_v47 }
 0x372   :  { %627 = vtanh.f32 %v512_v48 }
 0x376   :  { %v626_v49 = vpop.eup %625 }
 0x377   :  { %522 = vst.msk [vmem:[#allocation7 + $0x18] sm:$0xff] %vm149_vm1, %v626_v49 }
 0x378   :  { %v628_v50 = vpop.eup %627 }
 0x379   :  { %520 = vst.msk [vmem:[#allocation7 + $0x8] sm:$0xff] %vm149_vm1, %v628_v50 }
 0x37a   :  { %535 = dma.vmem_to_hbm [thread:$0]  %s528_s10, 512, %s530_s15, [#allocation4], %s734_s21, %s734_s21, %s735_s22  }
 0x37b   :  { %729 = dma.done.wait [#allocation4], 512  }
 0x37c   :  { %730 = vsyncadd [#allocation4], 4294966784 }
 0x37d   :  { %731 = dma.done.wait [#allocation9], 32  }
 0x37e   :  { %732 = vsyncadd [#allocation9], 4294967264 }
 0x37f   :  { %555 = vsyncpa [#allocation3], 1 }
 0x380   :  { %556 = vsyncpa [#allocation6], 1 }
 0x381   :  { %557 = vsyncpa [#allocation4], 1 }
 0x382   :  { %558 = vsyncpa [#allocation9], 1 }

// kernel: tpu_custom_call.1
= control target key start
LH: loop header
LB: loop body
LE: loop exit
PB: predicated region body
PF: predicated region fallthrough
CT: control target
= control target key end

     0   :  { %16 = vsyncpa [#allocation3], 0  ;;  %s956_s0 = inlined_call_operand.vmem [shape: f32[2,16,32], index: 0, kind: input, shape index: {}]   ;;  %s957_s1 = inlined_call_operand.hbm [shape: f32[2,8,64], index: 1, kind: input, shape index: {}]   ;;  %s958_s2 = inlined_call_operand.hbm [shape: f32[2,4,32], index: 2, kind: input, shape index: {}]   ;;  %s959_s3 = inlined_call_operand.vmem [shape: f32[2,16,1], index: 3, kind: input, shape index: {}]   ;;  %s960_s4 = inlined_call_operand.vmem [shape: f32[64,32], index: 4, kind: input, shape index: {}]   ;;  %s961_s5 = inlined_call_operand.vmem [shape: f32[1,32], index: 5, kind: input, shape index: {}]   ;;  %s962_s6 = inlined_call_operand.vmem [shape: f32[32,32], index: 6, kind: input, shape index: {}]   ;;  %s963_s7 = inlined_call_operand.vmem [shape: f32[32,32], index: 7, kind: input, shape index: {}]   ;;  %s964_s8 = inlined_call_operand.vmem [shape: f32[1,32], index: 8, kind: input, shape index: {}]   ;;  %s965_s9 = inlined_call_operand.hbm [shape: f32[2,16,32], index: 9, kind: output, shape index: {0}]   ;;  %s966_s10 = inlined_call_operand.hbm [shape: f32[2,16], index: 10, kind: output, shape index: {1}]  }
   0x1   :  { %17 = vsyncpa [#allocation6], 0 }
   0x2   :  { %18 = vsyncpa [#allocation4], 0 }
   0x3   :  { %19 = vsyncpa [#allocation9], 0  ;;  %s26_s15 = sshll.u32 %s957_s1, 4  ;;  %s733_s16 = smov [#allocation2]   ;;  %s27_s15 = int_to_ptr.hbm [resolvable:$true] %s26_s15 }
   0x4   :  { %s28_s17 = sshll.u32 %s733_s16, 4  ;;  %s39_s20 = sshll.u32 %s958_s2, 4  ;;  %s29_s17 = int_to_ptr.vmem [resolvable:$true] %s28_s17  ;;  %s40_s20 = int_to_ptr.hbm [resolvable:$true] %s39_s20 }
   0x5   :  { %s734_s21 = smov 128   ;;  %s735_s22 = smov 8  }
   0x6   :  { %34 = dma.hbm_to_vmem [thread:$0]  %s27_s15, 256, %s29_s17, [#allocation3], %s734_s21, %s734_s21, %s735_s22  }
   0x7   :  { %s736_s23 = smov [#allocation5]   ;;  %s737_s25 = smov 64  }
   0x8   :  { %s41_s24 = sshll.u32 %s736_s23, 4  ;;  %s738_s1 = smov 4   ;;  %s42_s24 = int_to_ptr.vmem [resolvable:$true] %s41_s24 }
   0x9   :  { %47 = dma.hbm_to_vmem [thread:$0]  %s40_s20, 128, %s42_s24, [#allocation6], %s737_s25, %s737_s25, %s738_s1  }
   0xa   :  { %725 = dma.done.wait [#allocation3], 256  }
   0xb   :  { %726 = vsyncadd [#allocation3], 4294967040 }
   0xc   :  { %727 = dma.done.wait [#allocation6], 128  }
   0xd   :  { %728 = vsyncadd [#allocation6], 4294967168  ;;  %v92_v0 = vld [vmem:[%s960_s4 + $0x30] sm:$0xff]  ;;  %v93_v1 = vld [vmem:[%s960_s4 + $0x38] sm:$0xff]  ;;  %vm102_vm0 = vcmask 523264   ;;  %vm149_vm1 = vcmask 261120  }
   0xe   :  { %v90_v2 = vld [vmem:[%s960_s4 + $0x20] sm:$0xff]  ;;  %v97_v3 = vpack.c.bf16 %v93_v1, %v92_v0  ;;  %v91_v4 = vld [vmem:[%s960_s4 + $0x28] sm:$0xff]  ;;  %v88_v6 = vld [vmem:[%s960_s4 + $0x10] sm:$0xff]  ;;  %v739_v31 = vmov 0   ;;  %vm408_vm2 = vcmask 1043456   ;;  %vm239_vm3 = vcmask 64512  }
   0xf   :  { %v96_v5 = vpack.c.bf16 %v91_v4, %v90_v2  ;;  %v89_v7 = vld [vmem:[%s960_s4 + $0x18] sm:$0xff]  ;;  %v86_v9 = vld [vmem:[%s960_s4] sm:$0xff]  ;;  %v87_v10 = vld [vmem:[%s960_s4 + $0x8] sm:$0xff]  ;;  %582 = vset.pattern.permute.xlu1 %v739_v31  ;;  %581 = vset.pattern.permute.xlu0 %v739_v31  ;;  %vm284_vm4 = vcmask 31744   ;;  %s543_s11 = sshll.u32 %s966_s10, 4  ;;  %s529_s15 = sshll.u32 %s965_s9, 4  ;;  %s544_s11 = int_to_ptr.hbm [resolvable:$true] %s543_s11  ;;  %s530_s15 = int_to_ptr.hbm [resolvable:$true] %s529_s15 }
  0x10   :  { %110 = vmatpush.bf16.msra.mxu0 %v97_v3  ;;  %v95_v8 = vpack.c.bf16 %v89_v7, %v88_v6  ;;  %v94_v11 = vpack.c.bf16 %v87_v10, %v86_v9  ;;  %v73_v12 = vld [vmem:[#allocation2] sm:$0xff]  ;;  %v74_v13 = vld [vmem:[#allocation2 + $0x8] sm:$0xff]  ;;  %v75_v15 = vld [vmem:[#allocation5] sm:$0xf] }
  0x11   :  { %v85_v14 = vpack.c.bf16 %v74_v13, %v73_v12  ;;  %v195_v16 = vpack.c.bf16 %v75_v15, %v75_v15  ;;  %v69_v18 = vld [vmem:[%s956_s0] sm:$0xff]  ;;  %v70_v19 = vld [vmem:[%s956_s0 + $0x8] sm:$0xff]  ;;  %v76_v25 = vld [vmem:[#allocation5 + $0x4] sm:$0xf] }
  0x12   :  { %v81_v20 = vpack.c.bf16 %v69_v18, %v69_v18  ;;  %v82_v21 = vpack.c.bf16 %v70_v19, %v70_v19  ;;  %v196_v26 = vpack.c.bf16 %v76_v25, %v76_v25  ;;  %v71_v27 = vld [vmem:[%s956_s0 + $0x10] sm:$0xff]  ;;  %v72_v28 = vld [vmem:[%s956_s0 + $0x18] sm:$0xff]  ;;  %v583_v36 = vld [vmem:[%s961_s5] ss:$0 sm:$0xff] }
  0x13   :  { %v198_v17 = vsel %vm149_vm1, %v195_v16, 0  ;;  %v83_v29 = vpack.c.bf16 %v71_v27, %v71_v27  ;;  %v84_v30 = vpack.c.bf16 %v72_v28, %v72_v28  ;;  %v77_v39 = vld [vmem:[%s959_s3] sm:$0xff]  ;;  %v79_v40 = vld [vmem:[%s959_s3 + $0x10] sm:$0xff]  ;;  %v78_v45 = vld [vmem:[%s959_s3 + $0x8] sm:$0xff] }
  0x14   :  { %111 = vmatpush.bf16.msra.mxu0 %v96_v5  ;;  %207 = vmatpush.bf16.xpose.msra.mxu3 %v198_v17  ;;  %v146_v22 = vunpack.c.l.b16 %v81_v20  ;;  %v147_v23 = vunpack.c.l.b16 %v82_v21  ;;  %v215_v32 = vsel %vm149_vm1, %v196_v26, 0  ;;  %v80_v46 = vld [vmem:[%s959_s3 + $0x18] sm:$0xff] }
  0x15   :  { %224 = vmatpush.bf16.xpose.msra.mxu1 %v215_v32  ;;  %v172_v33 = vunpack.c.l.b16 %v83_v29  ;;  %v173_v34 = vunpack.c.l.b16 %v84_v30  ;;  %126 = vperm.xlu1 %582, %v77_v39  }
  0x16   :  { %v837_v24 = vpack.c.b16 %v147_v23, %v146_v22  ;;  %136 = vperm.xlu0 %581, %v79_v40  }
  0x17   :  { %v848_v35 = vpack.c.b16 %v173_v34, %v172_v33 }
  0x18   :  { %112 = vmatpush.bf16.msra.mxu0 %v95_v8 }
  0x1b   :  { %562 = vmatmul.msk.bf16.vlgmr.msra.gmra.mxu3 %vm149_vm1, %v837_v24 }
  0x1c   :  { %113 = vmatpush.bf16.msra.mxu0 %v94_v11  ;;  %563 = vmatmul.msk.bf16.vlgmr.msra.gmra.mxu1 %vm149_vm1, %v848_v35 }
  0x1d   :  { %131 = vperm.xlu1 %582, %v78_v45  }
  0x1e   :  { %141 = vperm.xlu0 %581, %v80_v46  }
  0x1f   :  { %559 = vmatmul.msk.bf16.vlgmr.msra.gmra.mxu0 %vm102_vm0, %v85_v14 }
  0x87   :  { %v873_v53 = vpop.permute.xlu1 %126 }
  0x88   :  { %v137_v56 = vpop.permute.xlu0 %136 }
  0x8f   :  { %v877_v61 = vpop.permute.xlu1 %131 }
  0x90   :  { %v142_v3 = vpop.permute.xlu0 %141 }
  0x99   :  { %v226_v54 = vpop.f32.mrf.mxu1 }
  0x9a   :  { %v233_v58 = vmul.f32 0.17677669, %v226_v54  ;;  %v454_v54 = vld [vmem:[%s962_s6 + $0x18] sm:$0xff] }
  0x9c   :  { %v115_v37 = vpop.f32.mrf.mxu0  ;;  %v237_v60 = vadd.f32 %v233_v58, %v137_v56 }
  0x9d   :  { %v116_v38 = vadd.f32 %v583_v36, %v115_v37 }
  0x9e   :  { %v291_v1 = vsel %vm284_vm4, %v237_v60, -inf }
  0x9f   :  { %585 = vtanh.f32 %v116_v38  ;;  %v209_v38 = vpop.f32.mrf.mxu3 }
  0xa0   :  { %v231_v40 = vmul.f32 0.17677669, %v209_v38 }
  0xa1   :  { %v228_v62 = vpop.f32.mrf.mxu1 }
  0xa2   :  { %v234_v2 = vmul.f32 0.17677669, %v228_v62 }
  0xa4   :  { %v117_v41 = vpop.f32.mrf.mxu0  ;;  %v882_v5 = vadd.f32 %v234_v2, %v142_v3 }
  0xa5   :  { %v586_v42 = vpop.eup %585  ;;  %v118_v43 = vadd.f32 %v583_v36, %v117_v41 }
  0xa6   :  { %v122_v44 = vpack.c.bf16 %v586_v42, %v586_v42  ;;  %v294_v8 = vsel %vm284_vm4, %v882_v5, -inf  ;;  %v235_v42 = vadd.f32 %v231_v40, %v873_v53 }
  0xa7   :  { %587 = vtanh.f32 %v118_v43  ;;  %v211_v43 = vpop.f32.mrf.mxu3 }
  0xa8   :  { %v154_v47 = vsel %vm149_vm1, %v122_v44, 0  ;;  %v409_v52 = vsel %vm408_vm2, %v122_v44, 0  ;;  %v232_v44 = vmul.f32 0.17677669, %v211_v43  ;;  %v285_v45 = vsel %vm284_vm4, %v235_v42, -inf }
  0xa9   :  { %163 = vmatpush.bf16.xpose.msra.mxu2 %v154_v47 }
  0xaa   :  { %v236_v46 = vadd.f32 %v232_v44, %v877_v61 }
  0xac   :  { %v288_v47 = vsel %vm284_vm4, %v236_v46, -inf }
  0xad   :  { %v588_v48 = vpop.eup %587 }
  0xae   :  { %v123_v49 = vpack.c.bf16 %v588_v48, %v588_v48 }
  0xb0   :  { %560 = vmatmul.msk.bf16.vlgmr.msra.gmra.mxu2 %vm149_vm1, %v837_v24  ;;  %v179_v50 = vsel %vm149_vm1, %v123_v49, 0  ;;  %v433_v51 = vsel %vm408_vm2, %v123_v49, 0 }
  0xb1   :  { %188 = vmatpush.bf16.xpose.msrb.mxu2 %v179_v50  ;;  %442 = vmatpush.bf16.msrb.mxu3 %v433_v51 }
  0xb9   :  { %418 = vmatpush.bf16.msra.mxu2 %v409_v52 }
  0xc0   :  { %561 = vmatmul.msk.bf16.vlgmr.msrb.gmra.mxu2 %vm149_vm1, %v848_v35 }
 0x133   :  { %v165_v55 = vpop.f32.mrf.mxu2 }
 0x134   :  { %v166_v57 = vadd.f32 %v165_v55, %v873_v53  ;;  %v453_v53 = vld [vmem:[%s962_s6 + $0x10] sm:$0xff]  ;;  %v451_v55 = vld [vmem:[%s962_s6] sm:$0xff] }
 0x136   :  { %v240_v59 = vsel %vm239_vm3, %v166_v57, -inf }
 0x137   :  { %241 = vmax.xlane.f32.xlu0 %v240_v59 }
 0x13b   :  { %v167_v63 = vpop.f32.mrf.mxu2 }
 0x13c   :  { %v168_v0 = vadd.f32 %v167_v63, %v877_v61 }
 0x13e   :  { %v243_v4 = vsel %vm239_vm3, %v168_v0, -inf }
 0x13f   :  { %244 = vmax.xlane.f32.xlu1 %v243_v4  ;;  %292 = vmax.xlane.f32.xlu0 %v291_v1 }
 0x143   :  { %v190_v6 = vpop.f32.mrf.mxu2 }
 0x144   :  { %v191_v7 = vadd.f32 %v190_v6, %v137_v56  ;;  %v456_v56 = vpack.c.bf16 %v454_v54, %v453_v53 }
 0x146   :  { %v246_v9 = vsel %vm239_vm3, %v191_v7, -inf  ;;  %494 = vmatpush.bf16.msrb.mxu1 %v456_v56 }
 0x147   :  { %247 = vmax.xlane.f32.xlu2 %v246_v9  ;;  %295 = vmax.xlane.f32.xlu1 %v294_v8 }
 0x14b   :  { %v192_v10 = vpop.f32.mrf.mxu2 }
 0x14c   :  { %v193_v11 = vadd.f32 %v192_v10, %v142_v3 }
 0x14e   :  { %v249_v12 = vsel %vm239_vm3, %v193_v11, -inf }
 0x14f   :  { %250 = vmax.xlane.f32.xlu2 %v249_v12 }
 0x1aa   :  { %v242_v13 = vpop.xlane.xlu0 %241 }
 0x1ab   :  { %v252_v14 = vsub.f32 %v166_v57, %v242_v13  ;;  %v452_v57 = vld [vmem:[%s962_s6 + $0x8] sm:$0xff] }
 0x1ac   :  { %v455_v62 = vpack.c.bf16 %v452_v57, %v451_v55 }
 0x1ad   :  { %v256_v15 = vmul.f32 1.442695, %v252_v14 }
 0x1ae   :  { %495 = vmatpush.bf16.msrb.mxu1 %v455_v62 }
 0x1af   :  { %589 = vpow2.f32 %v256_v15 }
 0x1b1   :  { %568 = vmatmul.msk.bf16.vlgmr.msrb.gmra.mxu1 %vm149_vm1, %v837_v24 }
 0x1b2   :  { %v293_v16 = vpop.xlane.xlu0 %292  ;;  %v245_v27 = vpop.xlane.xlu1 %244 }
 0x1b3   :  { %v299_v17 = vsub.f32 %v237_v60, %v293_v16  ;;  %v253_v31 = vsub.f32 %v168_v0, %v245_v27  ;;  %v459_v27 = vld [vmem:[%s963_s7 + $0x10] sm:$0xff] }
 0x1b5   :  { %v590_v18 = vpop.eup %589  ;;  %v305_v19 = vmul.f32 1.442695, %v299_v17  ;;  %v258_v34 = vmul.f32 1.442695, %v253_v31 }
 0x1b6   :  { %v264_v20 = vsel %vm239_vm3, %v590_v18, 0.0 }
 0x1b7   :  { %265 = vadd.xlane.f32.xlu2 %v264_v20  ;;  %591 = vpow2.f32 %v305_v19 }
 0x1ba   :  { %v248_v21 = vpop.xlane.xlu2 %247 }
 0x1bb   :  { %v254_v22 = vsub.f32 %v191_v7, %v248_v21  ;;  %v296_v7 = vpop.xlane.xlu1 %295 }
 0x1bc   :  { %v300_v13 = vsub.f32 %v882_v5, %v296_v7 }
 0x1bd   :  { %v260_v23 = vmul.f32 1.442695, %v254_v22  ;;  %v592_v25 = vpop.eup %591 }
 0x1be   :  { %v315_v26 = vsel %vm284_vm4, %v592_v25, 0.0 }
 0x1bf   :  { %593 = vpow2.f32 %v260_v23  ;;  %316 = vadd.xlane.f32.xlu1 %v315_v26 }
 0x1c1   :  { %569 = vmatmul.msk.bf16.gmra.mxu1 %vm149_vm1, %v848_v35  ;;  %v457_v35 = vld [vmem:[%s963_s7] sm:$0xff] }
 0x1c2   :  { %v251_v28 = vpop.xlane.xlu2 %250 }
 0x1c3   :  { %v255_v29 = vsub.f32 %v193_v11, %v251_v28  ;;  %v460_v28 = vld [vmem:[%s963_s7 + $0x18] sm:$0xff] }
 0x1c5   :  { %v594_v30 = vpop.eup %593  ;;  %v262_v32 = vmul.f32 1.442695, %v255_v29  ;;  %v462_v29 = vpack.c.bf16 %v460_v28, %v459_v27 }
 0x1c6   :  { %v270_v33 = vsel %vm239_vm3, %v594_v30, 0.0 }
 0x1c7   :  { %595 = vpow2.f32 %v262_v32  ;;  %271 = vadd.xlane.f32.xlu2 %v270_v33  ;;  %570 = vmatpush.bf16.msra.mxu3 %v462_v29 }
 0x1c8   :  { %597 = vpow2.f32 %v258_v34  ;;  %475 = vmatpush.bf16.msrb.mxu0 %v462_v29 }
 0x1cd   :  { %v596_v36 = vpop.eup %595 }
 0x1ce   :  { %v273_v37 = vsel %vm239_vm3, %v596_v36, 0.0  ;;  %v598_v39 = vpop.eup %597 }
 0x1cf   :  { %274 = vadd.xlane.f32.xlu2 %v273_v37  ;;  %v267_v41 = vsel %vm239_vm3, %v598_v39, 0.0 }
 0x1d7   :  { %268 = vadd.xlane.f32.xlu2 %v267_v41 }
 0x1df   :  { %286 = vmax.xlane.f32.xlu2 %v285_v45 }
 0x1e7   :  { %289 = vmax.xlane.f32.xlu2 %v288_v47 }
 0x22a   :  { %v266_v48 = vpop.xlane.xlu2 %265 }
 0x232   :  { %v317_v32 = vpop.xlane.xlu1 %316 }
 0x233   :  { %vm354_vm6 = vweird.f32 %v317_v32 }
 0x23a   :  { %v272_v49 = vpop.xlane.xlu2 %271 }
 0x23b   :  { %599 = vrcp.f32 %v272_v49  ;;  %v360_v49 = vand.u32 2147483648, %v317_v32 }
 0x23d   :  { %v361_v57 = vor.u32 1.1754944e-38, %v360_v49 }
 0x241   :  { %v600_v51 = vpop.eup %599 }
 0x242   :  { %v275_v50 = vpop.xlane.xlu2 %274  ;;  %v282_v52 = vmul.f32 %v600_v51, %v594_v30  ;;  %v458_v30 = vld [vmem:[%s963_s7 + $0x8] sm:$0xff]  ;;  %v358_v51 = vand.u32 2147483647, %v317_v32  ;;  %s740_s7 = smov [#allocation8]  }
 0x243   :  { %601 = vrcp.f32 %v275_v50  ;;  %v461_v31 = vpack.c.bf16 %v458_v30, %v457_v35  ;;  %s541_s29 = sshll.u32 %s740_s7, 4  ;;  %v497_v35 = vpop.f32.mrf.mxu1  ;;  %s542_s29 = int_to_ptr.vmem [resolvable:$true] %s541_s29 }
 0x244   :  { %603 = vrcp.f32 %v266_v48  ;;  %v398_v59 = vpack.c.bf16 %v282_v52, %v282_v52  ;;  %v381_v48 = vlaneseq  ;;  %vm359_vm8 = vcmp.eq.f32.partialorder %v358_v51, 8.507059e+37 }
 0x245   :  { %571 = vmatpush.bf16.msra.mxu3 %v461_v31  ;;  %476 = vmatpush.bf16.msrb.mxu0 %v461_v31 }
 0x246   :  { %v427_v2 = vunpack.c.l.b16 %v398_v59  ;;  %v382_v56 = vand.u32 127, %v381_v48 }
 0x249   :  { %v602_v58 = vpop.eup %601 }
 0x24a   :  { %v283_v60 = vmul.f32 %v602_v58, %v596_v36  ;;  %v269_v61 = vpop.xlane.xlu2 %268  ;;  %v604_v63 = vpop.eup %603 }
 0x24b   :  { %605 = vrcp.f32 %v269_v61  ;;  %v280_v1 = vmul.f32 %v604_v63, %v590_v18  ;;  %v307_v18 = vmul.f32 1.442695, %v300_v13  ;;  %v499_v30 = vpop.f32.mrf.mxu1 }
 0x24c   :  { %v399_v0 = vpack.c.bf16 %v283_v60, %v283_v60 }
 0x24d   :  { %v396_v8 = vpack.c.bf16 %v280_v1, %v280_v1 }
 0x24e   :  { %v428_v3 = vunpack.c.l.b16 %v399_v0 }
 0x24f   :  { %v402_v15 = vunpack.c.l.b16 %v396_v8 }
 0x250   :  { %v429_v4 = vpack.c.b16 %v428_v3, %v427_v2 }
 0x251   :  { %v606_v6 = vpop.eup %605 }
 0x252   :  { %v281_v9 = vmul.f32 %v606_v6, %v598_v39  ;;  %565 = vmatmul.msk.bf16.vlgmr.msrb.gmra.mxu3 %vm239_vm3, %v429_v4  ;;  %v287_v10 = vpop.xlane.xlu2 %286 }
 0x253   :  { %v297_v11 = vsub.f32 %v235_v42, %v287_v10  ;;  %v502_v31 = vpop.f32.mrf.mxu1 }
 0x254   :  { %v397_v12 = vpack.c.bf16 %v281_v9, %v281_v9 }
 0x255   :  { %v301_v14 = vmul.f32 1.442695, %v297_v11 }
 0x256   :  { %v403_v16 = vunpack.c.l.b16 %v397_v12 }
 0x257   :  { %607 = vpow2.f32 %v301_v14  ;;  %v384_v14 = vadd.s32 4294967288, %v382_v56 }
 0x258   :  { %v404_v17 = vpack.c.b16 %v403_v16, %v402_v15  ;;  %609 = vpow2.f32 %v307_v18 }
 0x25a   :  { %564 = vmatmul.msk.bf16.vlgmr.msra.gmra.mxu2 %vm239_vm3, %v404_v17  ;;  %v290_v19 = vpop.xlane.xlu2 %289 }
 0x25b   :  { %v298_v24 = vsub.f32 %v236_v46, %v290_v19 }
 0x25d   :  { %v608_v20 = vpop.eup %607  ;;  %v303_v21 = vmul.f32 1.442695, %v298_v24 }
 0x25e   :  { %v309_v22 = vsel %vm284_vm4, %v608_v20, 0.0  ;;  %v610_v5 = vpop.eup %609 }
 0x25f   :  { %611 = vpow2.f32 %v303_v21  ;;  %310 = vadd.xlane.f32.xlu2 %v309_v22  ;;  %v318_v25 = vsel %vm284_vm4, %v610_v5, 0.0 }
 0x260   :  { %613 = vrcp.f32 %v317_v32 }
 0x265   :  { %v612_v23 = vpop.eup %611 }
 0x266   :  { %v312_v26 = vsel %vm284_vm4, %v612_v23, 0.0  ;;  %v614_v33 = vpop.eup %613 }
 0x267   :  { %319 = vadd.xlane.f32.xlu2 %v318_v25  ;;  %313 = vadd.xlane.f32.xlu0 %v312_v26  ;;  %v350_v34 = vmul.f32 %v614_v33, %v317_v32  ;;  %vm355_vm5 = vweird.f32 %v614_v33  ;;  %v584_v32 = vld [vmem:[%s964_s8] ss:$0 sm:$0xff]  ;;  %s741_s8 = smov [#allocation7]  }
 0x268   :  { %vm356_vm7 = vmor %vm354_vm6, %vm355_vm5  ;;  %vm386_vm6 = vcmask 130112   ;;  %s527_s10 = sshll.u32 %s741_s8, 4  ;;  %s528_s10 = int_to_ptr.vmem [resolvable:$true] %s527_s10 }
 0x269   :  { %v351_v37 = vsub.f32 1.0, %v350_v34 }
 0x26b   :  { %v352_v40 = vmul.f32 %v614_v33, %v351_v37 }
 0x26d   :  { %v353_v45 = vadd.f32 %v614_v33, %v352_v40  ;;  %v504_v40 = vpop.f32.mrf.mxu1 }
 0x26f   :  { %v357_v54 = vsel %vm356_vm7, %v614_v33, %v353_v45  ;;  %vm391_vm7 = vcmask 1041409  }
 0x270   :  { %v362_v61 = vsel %vm359_vm8, %v361_v57, %v357_v54  ;;  %vm394_vm8 = vcmask 123904  }
 0x271   :  { %v388_v22 = vperm.slane %v362_v61, %v382_v56 }
 0x2d2   :  { %v311_v36 = vpop.xlane.xlu2 %310 }
 0x2d3   :  { %615 = vrcp.f32 %v311_v36  ;;  %vm326_vm10 = vweird.f32 %v311_v36  ;;  %v332_v62 = vand.u32 2147483648, %v311_v36  ;;  %v330_v0 = vand.u32 2147483647, %v311_v36 }
 0x2d5   :  { %v444_v38 = vpop.f32.mrf.mxu3  ;;  %v333_v13 = vor.u32 1.1754944e-38, %v332_v62  ;;  %vm331_vm15 = vcmp.eq.f32.partialorder %v330_v0, 8.507059e+37 }
 0x2d9   :  { %v616_v39 = vpop.eup %615 }
 0x2da   :  { %v322_v41 = vmul.f32 %v616_v39, %v311_v36  ;;  %v320_v42 = vpop.xlane.xlu2 %319  ;;  %v314_v43 = vpop.xlane.xlu0 %313  ;;  %vm327_vm9 = vweird.f32 %v616_v39 }
 0x2db   :  { %617 = vrcp.f32 %v320_v42  ;;  %v372_v1 = vand.u32 2147483647, %v320_v42  ;;  %v374_v2 = vand.u32 2147483648, %v320_v42  ;;  %vm932_vm11 = vmor %vm326_vm10, %vm327_vm9  ;;  %v346_v8 = vand.u32 2147483648, %v314_v43 }
 0x2dc   :  { %v323_v44 = vsub.f32 1.0, %v322_v41  ;;  %619 = vrcp.f32 %v314_v43  ;;  %v344_v12 = vand.u32 2147483647, %v314_v43  ;;  %vm368_vm14 = vweird.f32 %v320_v42 }
 0x2dd   :  { %v420_v46 = vpop.f32.mrf.mxu2  ;;  %v446_v47 = vpop.f32.mrf.mxu3  ;;  %v375_v16 = vor.u32 1.1754944e-38, %v374_v2  ;;  %vm340_vm2 = vweird.f32 %v314_v43  ;;  %vm373_vm3 = vcmp.eq.f32.partialorder %v372_v1, 8.507059e+37  ;;  %v347_v24 = vor.u32 1.1754944e-38, %v346_v8 }
 0x2de   :  { %v450_v50 = vpack.c.bf16 %v446_v47, %v444_v38  ;;  %v324_v52 = vmul.f32 %v616_v39, %v323_v44  ;;  %vm345_vm5 = vcmp.eq.f32.partialorder %v344_v12, 8.507059e+37 }
 0x2e0   :  { %567 = vmatmul.msk.bf16.vlgmr.msra.gmra.mxu3 %vm149_vm1, %v450_v50  ;;  %v325_v59 = vadd.f32 %v616_v39, %v324_v52 }
 0x2e1   :  { %v618_v53 = vpop.eup %617 }
 0x2e2   :  { %v620_v55 = vpop.eup %619  ;;  %v364_v58 = vmul.f32 %v618_v53, %v320_v42  ;;  %vm369_vm12 = vweird.f32 %v618_v53  ;;  %v329_v10 = vsel %vm932_vm11, %v616_v39, %v325_v59 }
 0x2e3   :  { %v336_v60 = vmul.f32 %v620_v55, %v314_v43  ;;  %vm341_vm13 = vweird.f32 %v620_v55  ;;  %vm370_vm0 = vmor %vm368_vm14, %vm369_vm12  ;;  %v334_v18 = vsel %vm331_vm15, %v333_v13, %v329_v10 }
 0x2e4   :  { %v365_v63 = vsub.f32 1.0, %v364_v58  ;;  %vm342_vm4 = vmor %vm340_vm2, %vm341_vm13  ;;  %v383_v25 = vperm.slane %v334_v18, %v382_v56 }
 0x2e5   :  { %v337_v3 = vsub.f32 1.0, %v336_v60  ;;  %v422_v4 = vpop.f32.mrf.mxu2 }
 0x2e6   :  { %v366_v7 = vmul.f32 %v618_v53, %v365_v63  ;;  %v449_v9 = vpack.c.bf16 %v422_v4, %v420_v46 }
 0x2e7   :  { %v338_v11 = vmul.f32 %v620_v55, %v337_v3 }
 0x2e8   :  { %v367_v15 = vadd.f32 %v618_v53, %v366_v7  ;;  %566 = vmatmul.msk.bf16.vlgmr.msrb.gmra.mxu0 %vm149_vm1, %v449_v9 }
 0x2e9   :  { %v339_v17 = vadd.f32 %v620_v55, %v338_v11 }
 0x2ea   :  { %v371_v19 = vsel %vm370_vm0, %v618_v53, %v367_v15 }
 0x2eb   :  { %v376_v20 = vsel %vm373_vm3, %v375_v16, %v371_v19  ;;  %v343_v21 = vsel %vm342_vm4, %v620_v55, %v339_v17 }
 0x2ec   :  { %v389_v5 = vperm.slane %v376_v20, %v384_v14  ;;  %v348_v23 = vsel %vm345_vm5, %v347_v24, %v343_v21 }
 0x2ed   :  { %v385_v26 = vperm.slane %v348_v23, %v384_v14 }
 0x2ee   :  { %v390_v27 = vsel %vm386_vm6, %v389_v5, %v388_v22 }
 0x2ef   :  { %v387_v28 = vsel %vm386_vm6, %v385_v26, %v383_v25 }
 0x2f0   :  { %v392_v29 = vsel %vm391_vm7, %v390_v27, %v387_v28 }
 0x2f1   :  { %395 = vst.msk [vmem:[#allocation8] sm:$0x3] %vm394_vm8, %v392_v29 }
 0x2f2   :  { %546 = dma.vmem_to_hbm [thread:$0]  %s542_s29, 32, %s544_s11, [#allocation9]  }
 0x363   :  { %v483_v33 = vpop.f32.mrf.mxu3 }
 0x364   :  { %v503_v34 = vadd.f32 %v502_v31, %v483_v33 }
 0x365   :  { %v478_v36 = vpop.f32.mrf.mxu0 }
 0x366   :  { %v513_v37 = vadd.f32 %v584_v32, %v503_v34  ;;  %v498_v38 = vadd.f32 %v497_v35, %v478_v36 }
 0x368   :  { %621 = vtanh.f32 %v513_v37  ;;  %v511_v39 = vadd.f32 %v584_v32, %v498_v38 }
 0x36a   :  { %623 = vtanh.f32 %v511_v39 }
 0x36b   :  { %v485_v41 = vpop.f32.mrf.mxu3 }
 0x36c   :  { %v505_v42 = vadd.f32 %v504_v40, %v485_v41 }
 0x36d   :  { %v480_v43 = vpop.f32.mrf.mxu0 }
 0x36e   :  { %v622_v44 = vpop.eup %621  ;;  %v514_v45 = vadd.f32 %v584_v32, %v505_v42  ;;  %v500_v46 = vadd.f32 %v499_v30, %v480_v43 }
 0x36f   :  { %521 = vst.msk [vmem:[#allocation7 + $0x10] sm:$0xff] %vm149_vm1, %v622_v44 }
 0x370   :  { %v624_v47 = vpop.eup %623  ;;  %625 = vtanh.f32 %v514_v45  ;;  %v512_v48 = vadd.f32 %v584_v32, %v500_v46 }
 0x371   :  { %519 = vst.msk [vmem:[#allocation7] sm:$0xff] %vm149_vm1, %v624_v47 }
 0x372   :  { %627 = vtanh.f32 %v512_v48 }
 0x376   :  { %v626_v49 = vpop.eup %625 }
 0x377   :  { %522 = vst.msk [vmem:[#allocation7 + $0x18] sm:$0xff] %vm149_vm1, %v626_v49 }
 0x378   :  { %v628_v50 = vpop.eup %627 }
 0x379   :  { %520 = vst.msk [vmem:[#allocation7 + $0x8] sm:$0xff] %vm149_vm1, %v628_v50 }
 0x37a   :  { %535 = dma.vmem_to_hbm [thread:$0]  %s528_s10, 512, %s530_s15, [#allocation4], %s734_s21, %s734_s21, %s735_s22  }
 0x37b   :  { %729 = dma.done.wait [#allocation4], 512  }
 0x37c   :  { %730 = vsyncadd [#allocation4], 4294966784 }
 0x37d   :  { %731 = dma.done.wait [#allocation9], 32  }
 0x37e   :  { %732 = vsyncadd [#allocation9], 4294967264 }
 0x37f   :  { %555 = vsyncpa [#allocation3], 1 }
 0x380   :  { %556 = vsyncpa [#allocation6], 1 }
 0x381   :  { %557 = vsyncpa [#allocation4], 1 }
 0x382   :  { %558 = vsyncpa [#allocation9], 1 }

</bundles_post_ra>
